<compile_context>
chip_gen: v6e
topology: v6e:2x2x1
jax: 0.10.0
libtpu: 0.0.40
codegen_flags: <defaults>
</compile_context>

<pallas_src>
import functools
import math

import jax
import jax.numpy as jnp
from jax import lax
from jax.experimental import pallas as pl
from jax.experimental.pallas import tpu as pltpu


# ----------------------------- Pallas kernel ------------------------------ #
def _bilstm_linear_kernel(
    x_ref,       # (T*B, I)    bf16 time-major input, rows ordered (t, b)
    wih_ref,     # (I, 8H)     bf16 [fwd W_ih^T | bwd W_ih^T], g-cols pre-scaled by 2
    whh_ref,     # (2H, 8H)    bf16 block-diag [fwd W_hh^T ; bwd W_hh^T], g-cols x2
    b_ref,       # (1, 8H)     f32  [fwd b | bwd b], g-cols x2
    wlin_ref,    # (T*2H, C)   bf16 linear weight (original flatten order), transposed
    blin_ref,    # (1, C)      f32  linear bias
    out_ref,     # (B, C)      f32  output logits
    hall,        # scratch (B, T*2H) f32: hidden states in PyTorch flatten order
    xproj,       # scratch (T*B, 8H) f32: hoisted input projection, both directions
    *,
    seq_len: int,
    hidden: int,
    batch: int,
):
    T, H, B = seq_len, hidden, batch
    G = 4 * H

    # --- hoisted input projection: one big bf16 MXU matmul, biases folded in ---
    xproj[...] = (
        jnp.dot(x_ref[...], wih_ref[...], preferred_element_type=jnp.float32)
        + b_ref[...]
    )

    whh = whh_ref[...]  # bf16, block-diagonal (2H, 8H)

    def halfcell(gates_mx, pre, c):
        # PyTorch gate order: i, f, g, o.  g-gate columns were pre-scaled by 2, so
        # tanh(g_pre) == 2*sigmoid(2*g_pre) - 1 == 2*sig[:, 2H:3H] - 1.
        sig = jax.nn.sigmoid(gates_mx + pre)          # single full-width EUP pass
        i_g = sig[:, 0:H]
        f_g = sig[:, H:2 * H]
        g_g = 2.0 * sig[:, 2 * H:3 * H] - 1.0
        o_g = sig[:, 3 * H:4 * H]
        c_new = f_g * c + i_g * g_g
        h_new = o_g * jnp.tanh(c_new)
        return h_new, c_new

    zeros_h = jnp.zeros((B, H), jnp.float32)
    hcat = jnp.zeros((B, 2 * H), jnp.float32)         # [h_f | h_b]
    c_f, c_b = zeros_h, zeros_h

    # --- single fully-unrolled time loop; ONE fused recurrence dot per step ---
    for s in range(T):
        tb = T - 1 - s
        gboth = jnp.dot(hcat.astype(jnp.bfloat16), whh,
                        preferred_element_type=jnp.float32)      # (B, 8H)
        h_f, c_f = halfcell(gboth[:, 0:G], xproj[pl.ds(s * B, B), pl.ds(0, G)], c_f)
        h_b, c_b = halfcell(gboth[:, G:2 * G], xproj[pl.ds(tb * B, B), pl.ds(G, G)], c_b)
        hcat = jnp.concatenate([h_f, h_b], axis=-1)
        # PyTorch flatten order: column t*2H..t*2H+H is fwd(t), t*2H+H.. is bwd(t).
        hall[:, pl.ds(s * 2 * H, H)] = h_f
        hall[:, pl.ds(tb * 2 * H + H, H)] = h_b

    # --- linear head hoisted out of the recurrence: one big-K bf16 matmul ---
    out = (
        jnp.dot(hall[...].astype(jnp.bfloat16), wlin_ref[...],
                preferred_element_type=jnp.float32)
        + blin_ref[...]
    )
    out_ref[...] = out.astype(out_ref.dtype)


# ------------------------ one-time parameter prep -------------------------- #
def prepare_params(params, *, hidden, seq_len, num_classes):
    """Amortized once per parameter set: transposes, bias folding, g-gate 2x scaling,
    fwd/bwd concatenation, block-diag W_hh, bf16 casts."""
    H, T, C = hidden, seq_len, num_classes

    # Scale the g-gate rows (2H:3H, PyTorch gate order i,f,g,o) by 2 so that
    # tanh(g) can be computed as 2*sigmoid(2g) - 1 with a single sigmoid pass.
    gscale = jnp.concatenate(
        [jnp.ones((2 * H,)), 2.0 * jnp.ones((H,)), jnp.ones((H,))]
    ).astype(jnp.float32)

    def prep_dir(w_ih, w_hh, b_ih, b_hh):
        wih_t = (w_ih * gscale[:, None]).T               # (I, 4H)
        whh_t = (w_hh * gscale[:, None]).T               # (H, 4H)
        b = (b_ih + b_hh) * gscale                       # (4H,)
        return wih_t, whh_t, b

    wih_f, whh_f, b_f = prep_dir(params["w_ih_f"], params["w_hh_f"],
                                 params["b_ih_f"], params["b_hh_f"])
    wih_b, whh_b, b_b = prep_dir(params["w_ih_b"], params["w_hh_b"],
                                 params["b_ih_b"], params["b_hh_b"])

    wih_cat = jnp.concatenate([wih_f, wih_b], axis=1)              # (I, 8H)

    whh_blk = jnp.zeros((2 * H, 8 * H), jnp.float32)               # block-diag (2H, 8H)
    whh_blk = whh_blk.at[:H, :4 * H].set(whh_f)
    whh_blk = whh_blk.at[H:, 4 * H:].set(whh_b)

    b_cat = jnp.concatenate([b_f, b_b]).reshape(1, 8 * H)          # (1, 8H)

    # out.view(B, -1) flattens (B, T, 2H) -> columns ordered (t, [fwd H | bwd H]),
    # which is exactly how hall is written, so the original weight is used directly.
    wlin = params["w_lin"].T                                       # (T*2H, C)
    blin = params["b_lin"].reshape(1, C)

    return {
        "wih": wih_cat.astype(jnp.bfloat16),
        "whh": whh_blk.astype(jnp.bfloat16),
        "b": b_cat.astype(jnp.float32),
        "wlin": wlin.astype(jnp.bfloat16),
        "blin": blin.astype(jnp.float32),
    }


# ------------------------------ wrapper (glue) ----------------------------- #
def lstm_forward(x, prepped, *, hidden, seq_len, num_classes):
    """x: (B, input_size, seq_len), matching the PyTorch module's input (NCW)."""
    B, I, T = x.shape
    assert T == seq_len
    H, C = hidden, num_classes

    # Pad batch to the f32 sublane height (8) for dense vreg / MXU-row occupancy.
    B_pad = ((B + 7) // 8) * 8
    x_tbi = jnp.transpose(x, (2, 0, 1)).astype(jnp.float32)        # (T, B, I)
    x_tbi = jnp.pad(x_tbi, ((0, 0), (0, B_pad - B), (0, 0)))       # (T, B_pad, I)
    x_flat = x_tbi.reshape(T * B_pad, I).astype(jnp.bfloat16)      # rows ordered (t, b)

    kernel = functools.partial(
        _bilstm_linear_kernel, seq_len=T, hidden=H, batch=B_pad
    )
    vspec = pl.BlockSpec(memory_space=pltpu.MemorySpace.VMEM)

    out = pl.pallas_call(
        kernel,
        out_shape=jax.ShapeDtypeStruct((B_pad, C), jnp.float32),
        in_specs=[vspec] * 6,
        out_specs=vspec,
        scratch_shapes=[
            pltpu.VMEM((B_pad, T * 2 * H), jnp.float32),     # stacked hidden states
            pltpu.VMEM((T * B_pad, 8 * H), jnp.float32),     # hoisted x-projection
        ],
    )(
        x_flat,
        prepped["wih"], prepped["whh"], prepped["b"],
        prepped["wlin"], prepped["blin"],
    )
    return out[:B]


# --------------------------- pure-JAX reference ---------------------------- #
def lstm_ref(x, params, *, hidden, seq_len, num_classes):
    H = hidden
    x_bti = jnp.transpose(x, (0, 2, 1)).astype(jnp.float32)  # (B, T, I)
    B = x_bti.shape[0]

    def run_dir(w_ih, w_hh, b_ih, b_hh, reverse):
        def step(carry, xt):
            h, c = carry
            gates = xt @ w_ih.T + h @ w_hh.T + b_ih + b_hh
            i, f, g, o = jnp.split(gates, 4, axis=-1)
            i, f, o = jax.nn.sigmoid(i), jax.nn.sigmoid(f), jax.nn.sigmoid(o)
            g = jnp.tanh(g)
            c = f * c + i * g
            h = o * jnp.tanh(c)
            return (h, c), h

        init = (jnp.zeros((B, H), jnp.float32), jnp.zeros((B, H), jnp.float32))
        xs = jnp.transpose(x_bti, (1, 0, 2))  # (T, B, I)
        _, hs = lax.scan(step, init, xs, reverse=reverse)
        return jnp.transpose(hs, (1, 0, 2))   # (B, T, H)

    out_f = run_dir(params["w_ih_f"], params["w_hh_f"],
                    params["b_ih_f"], params["b_hh_f"], reverse=False)
    out_b = run_dir(params["w_ih_b"], params["w_hh_b"],
                    params["b_ih_b"], params["b_hh_b"], reverse=True)
    out = jnp.concatenate([out_f, out_b], axis=-1)          # (B, T, 2H)
    flat = out.reshape(B, -1)
    return flat @ params["w_lin"].T + params["b_lin"]


# ---------------------------------- main ----------------------------------- #
if __name__ == "__main__":
    B, I, T, H, C = 2, 8, 8, 32, 5  # batch, input_size, seq_length, hidden, classes

    key = jax.random.PRNGKey(0)
    keys = jax.random.split(key, 12)
    k_lstm = 1.0 / math.sqrt(H)
    k_lin = 1.0 / math.sqrt(2 * H * T)

    def u(k, shape, bound):
        return jax.random.uniform(k, shape, jnp.float32, -bound, bound)

    params = {
        "w_ih_f": u(keys[0], (4 * H, I), k_lstm),
        "w_hh_f": u(keys[1], (4 * H, H), k_lstm),
        "b_ih_f": u(keys[2], (4 * H,), k_lstm),
        "b_hh_f": u(keys[3], (4 * H,), k_lstm),
        "w_ih_b": u(keys[4], (4 * H, I), k_lstm),
        "w_hh_b": u(keys[5], (4 * H, H), k_lstm),
        "b_ih_b": u(keys[6], (4 * H,), k_lstm),
        "b_hh_b": u(keys[7], (4 * H,), k_lstm),
        "w_lin":  u(keys[8], (C, 2 * H * T), k_lin),
        "b_lin":  u(keys[9], (C,), k_lin),
    }

    x = jax.random.normal(keys[10], (B, I, T), jnp.float32)

    # Amortized parameter preprocessing + jitted forward.
    prepped = jax.tree.map(jax.block_until_ready,
                           prepare_params(params, hidden=H, seq_len=T, num_classes=C))
    fwd = jax.jit(functools.partial(lstm_forward, hidden=H, seq_len=T, num_classes=C))

    out = fwd(x, prepped)
    out = jax.block_until_ready(out)

    ref = lstm_ref(x, params, hidden=H, seq_len=T, num_classes=C)
    assert out.shape == (B, C)
    # bf16 MXU operands (f32 accumulation) -> loosened tolerance vs. pure-f32 reference.
    if not jnp.allclose(out, ref, atol=2.5e-2, rtol=2.5e-2):
        raise AssertionError(f"mismatch: max abs err {jnp.max(jnp.abs(out - ref))}")

    print("KERNEL_OK")
</pallas_src>

<mosaic_0001>
module attributes {stable_mosaic.version = 11 : i64} {
  func.func @_bilstm_linear_kernel(%arg0: memref<64x8xbf16, #tpu.memory_space<vmem>>, %arg1: memref<8x256xbf16, #tpu.memory_space<vmem>>, %arg2: memref<64x256xbf16, #tpu.memory_space<vmem>>, %arg3: memref<1x256xf32, #tpu.memory_space<vmem>>, %arg4: memref<512x5xbf16, #tpu.memory_space<vmem>>, %arg5: memref<1x5xf32, #tpu.memory_space<vmem>>, %arg6: memref<8x5xf32, #tpu.memory_space<vmem>>, %arg7: memref<8x512xf32, #tpu.memory_space<vmem>>, %arg8: memref<64x256xf32, #tpu.memory_space<vmem>>) attributes {dimension_semantics = [], scalar_prefetch = 0 : i64, scratch_operands = 2 : i64, tpu.core_type = #tpu.core_type<tc>} {
    %c0 = arith.constant 0 : index
    %c0_0 = arith.constant 0 : index
    %0 = vector.load %arg0[%c0, %c0_0] : memref<64x8xbf16, #tpu.memory_space<vmem>>, vector<64x8xbf16>
    %c0_1 = arith.constant 0 : index
    %c0_2 = arith.constant 0 : index
    %1 = vector.load %arg1[%c0_1, %c0_2] : memref<8x256xbf16, #tpu.memory_space<vmem>>, vector<8x256xbf16>
    %cst = arith.constant dense<0.000000e+00> : vector<64x256xf32>
    %2 = tpu.matmul %0, %1, %cst {dimension_numbers = #tpu.dot_dimension_numbers<[1], [0], [0], [1], [0, 0, 1, 1], [], []>} : vector<64x8xbf16>, vector<8x256xbf16>, vector<64x256xf32> -> vector<64x256xf32>
    %c0_3 = arith.constant 0 : index
    %c0_4 = arith.constant 0 : index
    %3 = vector.load %arg3[%c0_3, %c0_4] : memref<1x256xf32, #tpu.memory_space<vmem>>, vector<1x256xf32>
    %4 = vector.broadcast %3 : vector<1x256xf32> to vector<64x256xf32>
    %5 = arith.addf %2, %4 : vector<64x256xf32>
    %c0_5 = arith.constant 0 : index
    %c0_6 = arith.constant 0 : index
    %6 = vector.load %arg8[%c0_5, %c0_6] : memref<64x256xf32, #tpu.memory_space<vmem>>, vector<64x256xf32>
    tpu.vector_store %arg8[%c0_5, %c0_6], %5 {strides = array<i32>} : memref<64x256xf32, #tpu.memory_space<vmem>>, vector<64x256xf32>,
    %c0_7 = arith.constant 0 : index
    %c0_8 = arith.constant 0 : index
    %7 = vector.load %arg2[%c0_7, %c0_8] : memref<64x256xbf16, #tpu.memory_space<vmem>>, vector<64x256xbf16>
    %cst_9 = arith.constant 0.000000e+00 : f32
    %8 = vector.broadcast %cst_9 : f32 to vector<8x32xf32>
    %cst_10 = arith.constant 0.000000e+00 : f32
    %9 = vector.broadcast %cst_10 : f32 to vector<8x64xf32>
    %10 = arith.truncf %9 : vector<8x64xf32> to vector<8x64xbf16>
    %cst_11 = arith.constant dense<0.000000e+00> : vector<8x256xf32>
    %11 = tpu.matmul %10, %7, %cst_11 {dimension_numbers = #tpu.dot_dimension_numbers<[1], [0], [0], [1], [0, 0, 1, 1], [], []>} : vector<8x64xbf16>, vector<64x256xbf16>, vector<8x256xf32> -> vector<8x256xf32>
    %12 = vector.extract_strided_slice %11 {offsets = [0, 0], sizes = [8, 128], strides = [1, 1]} : vector<8x256xf32> to vector<8x128xf32>
    %c0_12 = arith.constant 0 : index
    %c0_13 = arith.constant 0 : index
    %13 = vector.load %arg8[%c0_12, %c0_13] : memref<64x256xf32, #tpu.memory_space<vmem>>, vector<8x128xf32>
    %14 = arith.addf %12, %13 : vector<8x128xf32>
    %15 = arith.negf %14 : vector<8x128xf32>
    %16 = math.exp %15 : vector<8x128xf32>
    %cst_14 = arith.constant 1.000000e+00 : f32
    %17 = vector.broadcast %cst_14 : f32 to vector<8x128xf32>
    %18 = arith.addf %17, %16 : vector<8x128xf32>
    %19 = arith.divf %17, %18 : vector<8x128xf32>
    %20 = vector.extract_strided_slice %19 {offsets = [0, 0], sizes = [8, 32], strides = [1, 1]} : vector<8x128xf32> to vector<8x32xf32>
    %21 = vector.extract_strided_slice %19 {offsets = [0, 32], sizes = [8, 32], strides = [1, 1]} : vector<8x128xf32> to vector<8x32xf32>
    %22 = vector.extract_strided_slice %19 {offsets = [0, 64], sizes = [8, 32], strides = [1, 1]} : vector<8x128xf32> to vector<8x32xf32>
    %cst_15 = arith.constant 2.000000e+00 : f32
    %23 = vector.broadcast %cst_15 : f32 to vector<8x32xf32>
    %24 = arith.mulf %23, %22 : vector<8x32xf32>
    %cst_16 = arith.constant 1.000000e+00 : f32
    %25 = vector.broadcast %cst_16 : f32 to vector<8x32xf32>
    %26 = arith.subf %24, %25 : vector<8x32xf32>
    %27 = vector.extract_strided_slice %19 {offsets = [0, 96], sizes = [8, 32], strides = [1, 1]} : vector<8x128xf32> to vector<8x32xf32>
    %28 = arith.mulf %21, %8 : vector<8x32xf32>
    %29 = arith.mulf %20, %26 : vector<8x32xf32>
    %30 = arith.addf %28, %29 : vector<8x32xf32>
    %31 = math.tanh %30 : vector<8x32xf32>
    %32 = arith.mulf %27, %31 : vector<8x32xf32>
    %33 = vector.extract_strided_slice %11 {offsets = [0, 128], sizes = [8, 128], strides = [1, 1]} : vector<8x256xf32> to vector<8x128xf32>
    %c56 = arith.constant 56 : index
    %c128 = arith.constant 128 : index
    %34 = vector.load %arg8[%c56, %c128] : memref<64x256xf32, #tpu.memory_space<vmem>>, vector<8x128xf32>
    %35 = arith.addf %33, %34 : vector<8x128xf32>
    %36 = arith.negf %35 : vector<8x128xf32>
    %37 = math.exp %36 : vector<8x128xf32>
    %cst_17 = arith.constant 1.000000e+00 : f32
    %38 = vector.broadcast %cst_17 : f32 to vector<8x128xf32>
    %39 = arith.addf %38, %37 : vector<8x128xf32>
    %40 = arith.divf %38, %39 : vector<8x128xf32>
    %41 = vector.extract_strided_slice %40 {offsets = [0, 0], sizes = [8, 32], strides = [1, 1]} : vector<8x128xf32> to vector<8x32xf32>
    %42 = vector.extract_strided_slice %40 {offsets = [0, 32], sizes = [8, 32], strides = [1, 1]} : vector<8x128xf32> to vector<8x32xf32>
    %43 = vector.extract_strided_slice %40 {offsets = [0, 64], sizes = [8, 32], strides = [1, 1]} : vector<8x128xf32> to vector<8x32xf32>
    %cst_18 = arith.constant 2.000000e+00 : f32
    %44 = vector.broadcast %cst_18 : f32 to vector<8x32xf32>
    %45 = arith.mulf %44, %43 : vector<8x32xf32>
    %cst_19 = arith.constant 1.000000e+00 : f32
    %46 = vector.broadcast %cst_19 : f32 to vector<8x32xf32>
    %47 = arith.subf %45, %46 : vector<8x32xf32>
    %48 = vector.extract_strided_slice %40 {offsets = [0, 96], sizes = [8, 32], strides = [1, 1]} : vector<8x128xf32> to vector<8x32xf32>
    %49 = arith.mulf %42, %8 : vector<8x32xf32>
    %50 = arith.mulf %41, %47 : vector<8x32xf32>
    %51 = arith.addf %49, %50 : vector<8x32xf32>
    %52 = math.tanh %51 : vector<8x32xf32>
    %53 = arith.mulf %48, %52 : vector<8x32xf32>
    %54 = tpu.concatenate %32, %53 in 1 : vector<8x32xf32>, vector<8x32xf32> -> vector<8x64xf32>
    %c0_20 = arith.constant 0 : index
    %c0_21 = arith.constant 0 : index
    %55 = vector.load %arg7[%c0_20, %c0_21] : memref<8x512xf32, #tpu.memory_space<vmem>>, vector<8x32xf32>
    tpu.vector_store %arg7[%c0_20, %c0_21], %32 {strides = array<i32>} : memref<8x512xf32, #tpu.memory_space<vmem>>, vector<8x32xf32>,
    %c0_22 = arith.constant 0 : index
    %c480 = arith.constant 480 : index
    %56 = vector.load %arg7[%c0_22, %c480] : memref<8x512xf32, #tpu.memory_space<vmem>>, vector<8x32xf32>
    tpu.vector_store %arg7[%c0_22, %c480], %53 {strides = array<i32>} : memref<8x512xf32, #tpu.memory_space<vmem>>, vector<8x32xf32>,
    %57 = arith.truncf %54 : vector<8x64xf32> to vector<8x64xbf16>
    %cst_23 = arith.constant dense<0.000000e+00> : vector<8x256xf32>
    %58 = tpu.matmul %57, %7, %cst_23 {dimension_numbers = #tpu.dot_dimension_numbers<[1], [0], [0], [1], [0, 0, 1, 1], [], []>} : vector<8x64xbf16>, vector<64x256xbf16>, vector<8x256xf32> -> vector<8x256xf32>
    %59 = vector.extract_strided_slice %58 {offsets = [0, 0], sizes = [8, 128], strides = [1, 1]} : vector<8x256xf32> to vector<8x128xf32>
    %c8 = arith.constant 8 : index
    %c0_24 = arith.constant 0 : index
    %60 = vector.load %arg8[%c8, %c0_24] : memref<64x256xf32, #tpu.memory_space<vmem>>, vector<8x128xf32>
    %61 = arith.addf %59, %60 : vector<8x128xf32>
    %62 = arith.negf %61 : vector<8x128xf32>
    %63 = math.exp %62 : vector<8x128xf32>
    %cst_25 = arith.constant 1.000000e+00 : f32
    %64 = vector.broadcast %cst_25 : f32 to vector<8x128xf32>
    %65 = arith.addf %64, %63 : vector<8x128xf32>
    %66 = arith.divf %64, %65 : vector<8x128xf32>
    %67 = vector.extract_strided_slice %66 {offsets = [0, 0], sizes = [8, 32], strides = [1, 1]} : vector<8x128xf32> to vector<8x32xf32>
    %68 = vector.extract_strided_slice %66 {offsets = [0, 32], sizes = [8, 32], strides = [1, 1]} : vector<8x128xf32> to vector<8x32xf32>
    %69 = vector.extract_strided_slice %66 {offsets = [0, 64], sizes = [8, 32], strides = [1, 1]} : vector<8x128xf32> to vector<8x32xf32>
    %cst_26 = arith.constant 2.000000e+00 : f32
    %70 = vector.broadcast %cst_26 : f32 to vector<8x32xf32>
    %71 = arith.mulf %70, %69 : vector<8x32xf32>
    %cst_27 = arith.constant 1.000000e+00 : f32
    %72 = vector.broadcast %cst_27 : f32 to vector<8x32xf32>
    %73 = arith.subf %71, %72 : vector<8x32xf32>
    %74 = vector.extract_strided_slice %66 {offsets = [0, 96], sizes = [8, 32], strides = [1, 1]} : vector<8x128xf32> to vector<8x32xf32>
    %75 = arith.mulf %68, %30 : vector<8x32xf32>
    %76 = arith.mulf %67, %73 : vector<8x32xf32>
    %77 = arith.addf %75, %76 : vector<8x32xf32>
    %78 = math.tanh %77 : vector<8x32xf32>
    %79 = arith.mulf %74, %78 : vector<8x32xf32>
    %80 = vector.extract_strided_slice %58 {offsets = [0, 128], sizes = [8, 128], strides = [1, 1]} : vector<8x256xf32> to vector<8x128xf32>
    %c48 = arith.constant 48 : index
    %c128_28 = arith.constant 128 : index
    %81 = vector.load %arg8[%c48, %c128_28] : memref<64x256xf32, #tpu.memory_space<vmem>>, vector<8x128xf32>
    %82 = arith.addf %80, %81 : vector<8x128xf32>
    %83 = arith.negf %82 : vector<8x128xf32>
    %84 = math.exp %83 : vector<8x128xf32>
    %cst_29 = arith.constant 1.000000e+00 : f32
    %85 = vector.broadcast %cst_29 : f32 to vector<8x128xf32>
    %86 = arith.addf %85, %84 : vector<8x128xf32>
    %87 = arith.divf %85, %86 : vector<8x128xf32>
    %88 = vector.extract_strided_slice %87 {offsets = [0, 0], sizes = [8, 32], strides = [1, 1]} : vector<8x128xf32> to vector<8x32xf32>
    %89 = vector.extract_strided_slice %87 {offsets = [0, 32], sizes = [8, 32], strides = [1, 1]} : vector<8x128xf32> to vector<8x32xf32>
    %90 = vector.extract_strided_slice %87 {offsets = [0, 64], sizes = [8, 32], strides = [1, 1]} : vector<8x128xf32> to vector<8x32xf32>
    %cst_30 = arith.constant 2.000000e+00 : f32
    %91 = vector.broadcast %cst_30 : f32 to vector<8x32xf32>
    %92 = arith.mulf %91, %90 : vector<8x32xf32>
    %cst_31 = arith.constant 1.000000e+00 : f32
    %93 = vector.broadcast %cst_31 : f32 to vector<8x32xf32>
    %94 = arith.subf %92, %93 : vector<8x32xf32>
    %95 = vector.extract_strided_slice %87 {offsets = [0, 96], sizes = [8, 32], strides = [1, 1]} : vector<8x128xf32> to vector<8x32xf32>
    %96 = arith.mulf %89, %51 : vector<8x32xf32>
    %97 = arith.mulf %88, %94 : vector<8x32xf32>
    %98 = arith.addf %96, %97 : vector<8x32xf32>
    %99 = math.tanh %98 : vector<8x32xf32>
    %100 = arith.mulf %95, %99 : vector<8x32xf32>
    %101 = tpu.concatenate %79, %100 in 1 : vector<8x32xf32>, vector<8x32xf32> -> vector<8x64xf32>
    %c0_32 = arith.constant 0 : index
    %c64 = arith.constant 64 : index
    %102 = vector.load %arg7[%c0_32, %c64] : memref<8x512xf32, #tpu.memory_space<vmem>>, vector<8x32xf32>
    tpu.vector_store %arg7[%c0_32, %c64], %79 {strides = array<i32>} : memref<8x512xf32, #tpu.memory_space<vmem>>, vector<8x32xf32>,
    %c0_33 = arith.constant 0 : index
    %c416 = arith.constant 416 : index
    %103 = vector.load %arg7[%c0_33, %c416] : memref<8x512xf32, #tpu.memory_space<vmem>>, vector<8x32xf32>
    tpu.vector_store %arg7[%c0_33, %c416], %100 {strides = array<i32>} : memref<8x512xf32, #tpu.memory_space<vmem>>, vector<8x32xf32>,
    %104 = arith.truncf %101 : vector<8x64xf32> to vector<8x64xbf16>
    %cst_34 = arith.constant dense<0.000000e+00> : vector<8x256xf32>
    %105 = tpu.matmul %104, %7, %cst_34 {dimension_numbers = #tpu.dot_dimension_numbers<[1], [0], [0], [1], [0, 0, 1, 1], [], []>} : vector<8x64xbf16>, vector<64x256xbf16>, vector<8x256xf32> -> vector<8x256xf32>
    %106 = vector.extract_strided_slice %105 {offsets = [0, 0], sizes = [8, 128], strides = [1, 1]} : vector<8x256xf32> to vector<8x128xf32>
    %c16 = arith.constant 16 : index
    %c0_35 = arith.constant 0 : index
    %107 = vector.load %arg8[%c16, %c0_35] : memref<64x256xf32, #tpu.memory_space<vmem>>, vector<8x128xf32>
    %108 = arith.addf %106, %107 : vector<8x128xf32>
    %109 = arith.negf %108 : vector<8x128xf32>
    %110 = math.exp %109 : vector<8x128xf32>
    %cst_36 = arith.constant 1.000000e+00 : f32
    %111 = vector.broadcast %cst_36 : f32 to vector<8x128xf32>
    %112 = arith.addf %111, %110 : vector<8x128xf32>
    %113 = arith.divf %111, %112 : vector<8x128xf32>
    %114 = vector.extract_strided_slice %113 {offsets = [0, 0], sizes = [8, 32], strides = [1, 1]} : vector<8x128xf32> to vector<8x32xf32>
    %115 = vector.extract_strided_slice %113 {offsets = [0, 32], sizes = [8, 32], strides = [1, 1]} : vector<8x128xf32> to vector<8x32xf32>
    %116 = vector.extract_strided_slice %113 {offsets = [0, 64], sizes = [8, 32], strides = [1, 1]} : vector<8x128xf32> to vector<8x32xf32>
    %cst_37 = arith.constant 2.000000e+00 : f32
    %117 = vector.broadcast %cst_37 : f32 to vector<8x32xf32>
    %118 = arith.mulf %117, %116 : vector<8x32xf32>
    %cst_38 = arith.constant 1.000000e+00 : f32
    %119 = vector.broadcast %cst_38 : f32 to vector<8x32xf32>
    %120 = arith.subf %118, %119 : vector<8x32xf32>
    %121 = vector.extract_strided_slice %113 {offsets = [0, 96], sizes = [8, 32], strides = [1, 1]} : vector<8x128xf32> to vector<8x32xf32>
    %122 = arith.mulf %115, %77 : vector<8x32xf32>
    %123 = arith.mulf %114, %120 : vector<8x32xf32>
    %124 = arith.addf %122, %123 : vector<8x32xf32>
    %125 = math.tanh %124 : vector<8x32xf32>
    %126 = arith.mulf %121, %125 : vector<8x32xf32>
    %127 = vector.extract_strided_slice %105 {offsets = [0, 128], sizes = [8, 128], strides = [1, 1]} : vector<8x256xf32> to vector<8x128xf32>
    %c40 = arith.constant 40 : index
    %c128_39 = arith.constant 128 : index
    %128 = vector.load %arg8[%c40, %c128_39] : memref<64x256xf32, #tpu.memory_space<vmem>>, vector<8x128xf32>
    %129 = arith.addf %127, %128 : vector<8x128xf32>
    %130 = arith.negf %129 : vector<8x128xf32>
    %131 = math.exp %130 : vector<8x128xf32>
    %cst_40 = arith.constant 1.000000e+00 : f32
    %132 = vector.broadcast %cst_40 : f32 to vector<8x128xf32>
    %133 = arith.addf %132, %131 : vector<8x128xf32>
    %134 = arith.divf %132, %133 : vector<8x128xf32>
    %135 = vector.extract_strided_slice %134 {offsets = [0, 0], sizes = [8, 32], strides = [1, 1]} : vector<8x128xf32> to vector<8x32xf32>
    %136 = vector.extract_strided_slice %134 {offsets = [0, 32], sizes = [8, 32], strides = [1, 1]} : vector<8x128xf32> to vector<8x32xf32>
    %137 = vector.extract_strided_slice %134 {offsets = [0, 64], sizes = [8, 32], strides = [1, 1]} : vector<8x128xf32> to vector<8x32xf32>
    %cst_41 = arith.constant 2.000000e+00 : f32
    %138 = vector.broadcast %cst_41 : f32 to vector<8x32xf32>
    %139 = arith.mulf %138, %137 : vector<8x32xf32>
    %cst_42 = arith.constant 1.000000e+00 : f32
    %140 = vector.broadcast %cst_42 : f32 to vector<8x32xf32>
    %141 = arith.subf %139, %140 : vector<8x32xf32>
    %142 = vector.extract_strided_slice %134 {offsets = [0, 96], sizes = [8, 32], strides = [1, 1]} : vector<8x128xf32> to vector<8x32xf32>
    %143 = arith.mulf %136, %98 : vector<8x32xf32>
    %144 = arith.mulf %135, %141 : vector<8x32xf32>
    %145 = arith.addf %143, %144 : vector<8x32xf32>
    %146 = math.tanh %145 : vector<8x32xf32>
    %147 = arith.mulf %142, %146 : vector<8x32xf32>
    %148 = tpu.concatenate %126, %147 in 1 : vector<8x32xf32>, vector<8x32xf32> -> vector<8x64xf32>
    %c0_43 = arith.constant 0 : index
    %c128_44 = arith.constant 128 : index
    %149 = vector.load %arg7[%c0_43, %c128_44] : memref<8x512xf32, #tpu.memory_space<vmem>>, vector<8x32xf32>
    tpu.vector_store %arg7[%c0_43, %c128_44], %126 {strides = array<i32>} : memref<8x512xf32, #tpu.memory_space<vmem>>, vector<8x32xf32>,
    %c0_45 = arith.constant 0 : index
    %c352 = arith.constant 352 : index
    %150 = vector.load %arg7[%c0_45, %c352] : memref<8x512xf32, #tpu.memory_space<vmem>>, vector<8x32xf32>
    tpu.vector_store %arg7[%c0_45, %c352], %147 {strides = array<i32>} : memref<8x512xf32, #tpu.memory_space<vmem>>, vector<8x32xf32>,
    %151 = arith.truncf %148 : vector<8x64xf32> to vector<8x64xbf16>
    %cst_46 = arith.constant dense<0.000000e+00> : vector<8x256xf32>
    %152 = tpu.matmul %151, %7, %cst_46 {dimension_numbers = #tpu.dot_dimension_numbers<[1], [0], [0], [1], [0, 0, 1, 1], [], []>} : vector<8x64xbf16>, vector<64x256xbf16>, vector<8x256xf32> -> vector<8x256xf32>
    %153 = vector.extract_strided_slice %152 {offsets = [0, 0], sizes = [8, 128], strides = [1, 1]} : vector<8x256xf32> to vector<8x128xf32>
    %c24 = arith.constant 24 : index
    %c0_47 = arith.constant 0 : index
    %154 = vector.load %arg8[%c24, %c0_47] : memref<64x256xf32, #tpu.memory_space<vmem>>, vector<8x128xf32>
    %155 = arith.addf %153, %154 : vector<8x128xf32>
    %156 = arith.negf %155 : vector<8x128xf32>
    %157 = math.exp %156 : vector<8x128xf32>
    %cst_48 = arith.constant 1.000000e+00 : f32
    %158 = vector.broadcast %cst_48 : f32 to vector<8x128xf32>
    %159 = arith.addf %158, %157 : vector<8x128xf32>
    %160 = arith.divf %158, %159 : vector<8x128xf32>
    %161 = vector.extract_strided_slice %160 {offsets = [0, 0], sizes = [8, 32], strides = [1, 1]} : vector<8x128xf32> to vector<8x32xf32>
    %162 = vector.extract_strided_slice %160 {offsets = [0, 32], sizes = [8, 32], strides = [1, 1]} : vector<8x128xf32> to vector<8x32xf32>
    %163 = vector.extract_strided_slice %160 {offsets = [0, 64], sizes = [8, 32], strides = [1, 1]} : vector<8x128xf32> to vector<8x32xf32>
    %cst_49 = arith.constant 2.000000e+00 : f32
    %164 = vector.broadcast %cst_49 : f32 to vector<8x32xf32>
    %165 = arith.mulf %164, %163 : vector<8x32xf32>
    %cst_50 = arith.constant 1.000000e+00 : f32
    %166 = vector.broadcast %cst_50 : f32 to vector<8x32xf32>
    %167 = arith.subf %165, %166 : vector<8x32xf32>
    %168 = vector.extract_strided_slice %160 {offsets = [0, 96], sizes = [8, 32], strides = [1, 1]} : vector<8x128xf32> to vector<8x32xf32>
    %169 = arith.mulf %162, %124 : vector<8x32xf32>
    %170 = arith.mulf %161, %167 : vector<8x32xf32>
    %171 = arith.addf %169, %170 : vector<8x32xf32>
    %172 = math.tanh %171 : vector<8x32xf32>
    %173 = arith.mulf %168, %172 : vector<8x32xf32>
    %174 = vector.extract_strided_slice %152 {offsets = [0, 128], sizes = [8, 128], strides = [1, 1]} : vector<8x256xf32> to vector<8x128xf32>
    %c32 = arith.constant 32 : index
    %c128_51 = arith.constant 128 : index
    %175 = vector.load %arg8[%c32, %c128_51] : memref<64x256xf32, #tpu.memory_space<vmem>>, vector<8x128xf32>
    %176 = arith.addf %174, %175 : vector<8x128xf32>
    %177 = arith.negf %176 : vector<8x128xf32>
    %178 = math.exp %177 : vector<8x128xf32>
    %cst_52 = arith.constant 1.000000e+00 : f32
    %179 = vector.broadcast %cst_52 : f32 to vector<8x128xf32>
    %180 = arith.addf %179, %178 : vector<8x128xf32>
    %181 = arith.divf %179, %180 : vector<8x128xf32>
    %182 = vector.extract_strided_slice %181 {offsets = [0, 0], sizes = [8, 32], strides = [1, 1]} : vector<8x128xf32> to vector<8x32xf32>
    %183 = vector.extract_strided_slice %181 {offsets = [0, 32], sizes = [8, 32], strides = [1, 1]} : vector<8x128xf32> to vector<8x32xf32>
    %184 = vector.extract_strided_slice %181 {offsets = [0, 64], sizes = [8, 32], strides = [1, 1]} : vector<8x128xf32> to vector<8x32xf32>
    %cst_53 = arith.constant 2.000000e+00 : f32
    %185 = vector.broadcast %cst_53 : f32 to vector<8x32xf32>
    %186 = arith.mulf %185, %184 : vector<8x32xf32>
    %cst_54 = arith.constant 1.000000e+00 : f32
    %187 = vector.broadcast %cst_54 : f32 to vector<8x32xf32>
    %188 = arith.subf %186, %187 : vector<8x32xf32>
    %189 = vector.extract_strided_slice %181 {offsets = [0, 96], sizes = [8, 32], strides = [1, 1]} : vector<8x128xf32> to vector<8x32xf32>
    %190 = arith.mulf %183, %145 : vector<8x32xf32>
    %191 = arith.mulf %182, %188 : vector<8x32xf32>
    %192 = arith.addf %190, %191 : vector<8x32xf32>
    %193 = math.tanh %192 : vector<8x32xf32>
    %194 = arith.mulf %189, %193 : vector<8x32xf32>
    %195 = tpu.concatenate %173, %194 in 1 : vector<8x32xf32>, vector<8x32xf32> -> vector<8x64xf32>
    %c0_55 = arith.constant 0 : index
    %c192 = arith.constant 192 : index
    %196 = vector.load %arg7[%c0_55, %c192] : memref<8x512xf32, #tpu.memory_space<vmem>>, vector<8x32xf32>
    tpu.vector_store %arg7[%c0_55, %c192], %173 {strides = array<i32>} : memref<8x512xf32, #tpu.memory_space<vmem>>, vector<8x32xf32>,
    %c0_56 = arith.constant 0 : index
    %c288 = arith.constant 288 : index
    %197 = vector.load %arg7[%c0_56, %c288] : memref<8x512xf32, #tpu.memory_space<vmem>>, vector<8x32xf32>
    tpu.vector_store %arg7[%c0_56, %c288], %194 {strides = array<i32>} : memref<8x512xf32, #tpu.memory_space<vmem>>, vector<8x32xf32>,
    %198 = arith.truncf %195 : vector<8x64xf32> to vector<8x64xbf16>
    %cst_57 = arith.constant dense<0.000000e+00> : vector<8x256xf32>
    %199 = tpu.matmul %198, %7, %cst_57 {dimension_numbers = #tpu.dot_dimension_numbers<[1], [0], [0], [1], [0, 0, 1, 1], [], []>} : vector<8x64xbf16>, vector<64x256xbf16>, vector<8x256xf32> -> vector<8x256xf32>
    %200 = vector.extract_strided_slice %199 {offsets = [0, 0], sizes = [8, 128], strides = [1, 1]} : vector<8x256xf32> to vector<8x128xf32>
    %c32_58 = arith.constant 32 : index
    %c0_59 = arith.constant 0 : index
    %201 = vector.load %arg8[%c32_58, %c0_59] : memref<64x256xf32, #tpu.memory_space<vmem>>, vector<8x128xf32>
    %202 = arith.addf %200, %201 : vector<8x128xf32>
    %203 = arith.negf %202 : vector<8x128xf32>
    %204 = math.exp %203 : vector<8x128xf32>
    %cst_60 = arith.constant 1.000000e+00 : f32
    %205 = vector.broadcast %cst_60 : f32 to vector<8x128xf32>
    %206 = arith.addf %205, %204 : vector<8x128xf32>
    %207 = arith.divf %205, %206 : vector<8x128xf32>
    %208 = vector.extract_strided_slice %207 {offsets = [0, 0], sizes = [8, 32], strides = [1, 1]} : vector<8x128xf32> to vector<8x32xf32>
    %209 = vector.extract_strided_slice %207 {offsets = [0, 32], sizes = [8, 32], strides = [1, 1]} : vector<8x128xf32> to vector<8x32xf32>
    %210 = vector.extract_strided_slice %207 {offsets = [0, 64], sizes = [8, 32], strides = [1, 1]} : vector<8x128xf32> to vector<8x32xf32>
    %cst_61 = arith.constant 2.000000e+00 : f32
    %211 = vector.broadcast %cst_61 : f32 to vector<8x32xf32>
    %212 = arith.mulf %211, %210 : vector<8x32xf32>
    %cst_62 = arith.constant 1.000000e+00 : f32
    %213 = vector.broadcast %cst_62 : f32 to vector<8x32xf32>
    %214 = arith.subf %212, %213 : vector<8x32xf32>
    %215 = vector.extract_strided_slice %207 {offsets = [0, 96], sizes = [8, 32], strides = [1, 1]} : vector<8x128xf32> to vector<8x32xf32>
    %216 = arith.mulf %209, %171 : vector<8x32xf32>
    %217 = arith.mulf %208, %214 : vector<8x32xf32>
    %218 = arith.addf %216, %217 : vector<8x32xf32>
    %219 = math.tanh %218 : vector<8x32xf32>
    %220 = arith.mulf %215, %219 : vector<8x32xf32>
    %221 = vector.extract_strided_slice %199 {offsets = [0, 128], sizes = [8, 128], strides = [1, 1]} : vector<8x256xf32> to vector<8x128xf32>
    %c24_63 = arith.constant 24 : index
    %c128_64 = arith.constant 128 : index
    %222 = vector.load %arg8[%c24_63, %c128_64] : memref<64x256xf32, #tpu.memory_space<vmem>>, vector<8x128xf32>
    %223 = arith.addf %221, %222 : vector<8x128xf32>
    %224 = arith.negf %223 : vector<8x128xf32>
    %225 = math.exp %224 : vector<8x128xf32>
    %cst_65 = arith.constant 1.000000e+00 : f32
    %226 = vector.broadcast %cst_65 : f32 to vector<8x128xf32>
    %227 = arith.addf %226, %225 : vector<8x128xf32>
    %228 = arith.divf %226, %227 : vector<8x128xf32>
    %229 = vector.extract_strided_slice %228 {offsets = [0, 0], sizes = [8, 32], strides = [1, 1]} : vector<8x128xf32> to vector<8x32xf32>
    %230 = vector.extract_strided_slice %228 {offsets = [0, 32], sizes = [8, 32], strides = [1, 1]} : vector<8x128xf32> to vector<8x32xf32>
    %231 = vector.extract_strided_slice %228 {offsets = [0, 64], sizes = [8, 32], strides = [1, 1]} : vector<8x128xf32> to vector<8x32xf32>
    %cst_66 = arith.constant 2.000000e+00 : f32
    %232 = vector.broadcast %cst_66 : f32 to vector<8x32xf32>
    %233 = arith.mulf %232, %231 : vector<8x32xf32>
    %cst_67 = arith.constant 1.000000e+00 : f32
    %234 = vector.broadcast %cst_67 : f32 to vector<8x32xf32>
    %235 = arith.subf %233, %234 : vector<8x32xf32>
    %236 = vector.extract_strided_slice %228 {offsets = [0, 96], sizes = [8, 32], strides = [1, 1]} : vector<8x128xf32> to vector<8x32xf32>
    %237 = arith.mulf %230, %192 : vector<8x32xf32>
    %238 = arith.mulf %229, %235 : vector<8x32xf32>
    %239 = arith.addf %237, %238 : vector<8x32xf32>
    %240 = math.tanh %239 : vector<8x32xf32>
    %241 = arith.mulf %236, %240 : vector<8x32xf32>
    %242 = tpu.concatenate %220, %241 in 1 : vector<8x32xf32>, vector<8x32xf32> -> vector<8x64xf32>
    %c0_68 = arith.constant 0 : index
    %c256 = arith.constant 256 : index
    %243 = vector.load %arg7[%c0_68, %c256] : memref<8x512xf32, #tpu.memory_space<vmem>>, vector<8x32xf32>
    tpu.vector_store %arg7[%c0_68, %c256], %220 {strides = array<i32>} : memref<8x512xf32, #tpu.memory_space<vmem>>, vector<8x32xf32>,
    %c0_69 = arith.constant 0 : index
    %c224 = arith.constant 224 : index
    %244 = vector.load %arg7[%c0_69, %c224] : memref<8x512xf32, #tpu.memory_space<vmem>>, vector<8x32xf32>
    tpu.vector_store %arg7[%c0_69, %c224], %241 {strides = array<i32>} : memref<8x512xf32, #tpu.memory_space<vmem>>, vector<8x32xf32>,
    %245 = arith.truncf %242 : vector<8x64xf32> to vector<8x64xbf16>
    %cst_70 = arith.constant dense<0.000000e+00> : vector<8x256xf32>
    %246 = tpu.matmul %245, %7, %cst_70 {dimension_numbers = #tpu.dot_dimension_numbers<[1], [0], [0], [1], [0, 0, 1, 1], [], []>} : vector<8x64xbf16>, vector<64x256xbf16>, vector<8x256xf32> -> vector<8x256xf32>
    %247 = vector.extract_strided_slice %246 {offsets = [0, 0], sizes = [8, 128], strides = [1, 1]} : vector<8x256xf32> to vector<8x128xf32>
    %c40_71 = arith.constant 40 : index
    %c0_72 = arith.constant 0 : index
    %248 = vector.load %arg8[%c40_71, %c0_72] : memref<64x256xf32, #tpu.memory_space<vmem>>, vector<8x128xf32>
    %249 = arith.addf %247, %248 : vector<8x128xf32>
    %250 = arith.negf %249 : vector<8x128xf32>
    %251 = math.exp %250 : vector<8x128xf32>
    %cst_73 = arith.constant 1.000000e+00 : f32
    %252 = vector.broadcast %cst_73 : f32 to vector<8x128xf32>
    %253 = arith.addf %252, %251 : vector<8x128xf32>
    %254 = arith.divf %252, %253 : vector<8x128xf32>
    %255 = vector.extract_strided_slice %254 {offsets = [0, 0], sizes = [8, 32], strides = [1, 1]} : vector<8x128xf32> to vector<8x32xf32>
    %256 = vector.extract_strided_slice %254 {offsets = [0, 32], sizes = [8, 32], strides = [1, 1]} : vector<8x128xf32> to vector<8x32xf32>
    %257 = vector.extract_strided_slice %254 {offsets = [0, 64], sizes = [8, 32], strides = [1, 1]} : vector<8x128xf32> to vector<8x32xf32>
    %cst_74 = arith.constant 2.000000e+00 : f32
    %258 = vector.broadcast %cst_74 : f32 to vector<8x32xf32>
    %259 = arith.mulf %258, %257 : vector<8x32xf32>
    %cst_75 = arith.constant 1.000000e+00 : f32
    %260 = vector.broadcast %cst_75 : f32 to vector<8x32xf32>
    %261 = arith.subf %259, %260 : vector<8x32xf32>
    %262 = vector.extract_strided_slice %254 {offsets = [0, 96], sizes = [8, 32], strides = [1, 1]} : vector<8x128xf32> to vector<8x32xf32>
    %263 = arith.mulf %256, %218 : vector<8x32xf32>
    %264 = arith.mulf %255, %261 : vector<8x32xf32>
    %265 = arith.addf %263, %264 : vector<8x32xf32>
    %266 = math.tanh %265 : vector<8x32xf32>
    %267 = arith.mulf %262, %266 : vector<8x32xf32>
    %268 = vector.extract_strided_slice %246 {offsets = [0, 128], sizes = [8, 128], strides = [1, 1]} : vector<8x256xf32> to vector<8x128xf32>
    %c16_76 = arith.constant 16 : index
    %c128_77 = arith.constant 128 : index
    %269 = vector.load %arg8[%c16_76, %c128_77] : memref<64x256xf32, #tpu.memory_space<vmem>>, vector<8x128xf32>
    %270 = arith.addf %268, %269 : vector<8x128xf32>
    %271 = arith.negf %270 : vector<8x128xf32>
    %272 = math.exp %271 : vector<8x128xf32>
    %cst_78 = arith.constant 1.000000e+00 : f32
    %273 = vector.broadcast %cst_78 : f32 to vector<8x128xf32>
    %274 = arith.addf %273, %272 : vector<8x128xf32>
    %275 = arith.divf %273, %274 : vector<8x128xf32>
    %276 = vector.extract_strided_slice %275 {offsets = [0, 0], sizes = [8, 32], strides = [1, 1]} : vector<8x128xf32> to vector<8x32xf32>
    %277 = vector.extract_strided_slice %275 {offsets = [0, 32], sizes = [8, 32], strides = [1, 1]} : vector<8x128xf32> to vector<8x32xf32>
    %278 = vector.extract_strided_slice %275 {offsets = [0, 64], sizes = [8, 32], strides = [1, 1]} : vector<8x128xf32> to vector<8x32xf32>
    %cst_79 = arith.constant 2.000000e+00 : f32
    %279 = vector.broadcast %cst_79 : f32 to vector<8x32xf32>
    %280 = arith.mulf %279, %278 : vector<8x32xf32>
    %cst_80 = arith.constant 1.000000e+00 : f32
    %281 = vector.broadcast %cst_80 : f32 to vector<8x32xf32>
    %282 = arith.subf %280, %281 : vector<8x32xf32>
    %283 = vector.extract_strided_slice %275 {offsets = [0, 96], sizes = [8, 32], strides = [1, 1]} : vector<8x128xf32> to vector<8x32xf32>
    %284 = arith.mulf %277, %239 : vector<8x32xf32>
    %285 = arith.mulf %276, %282 : vector<8x32xf32>
    %286 = arith.addf %284, %285 : vector<8x32xf32>
    %287 = math.tanh %286 : vector<8x32xf32>
    %288 = arith.mulf %283, %287 : vector<8x32xf32>
    %289 = tpu.concatenate %267, %288 in 1 : vector<8x32xf32>, vector<8x32xf32> -> vector<8x64xf32>
    %c0_81 = arith.constant 0 : index
    %c320 = arith.constant 320 : index
    %290 = vector.load %arg7[%c0_81, %c320] : memref<8x512xf32, #tpu.memory_space<vmem>>, vector<8x32xf32>
    tpu.vector_store %arg7[%c0_81, %c320], %267 {strides = array<i32>} : memref<8x512xf32, #tpu.memory_space<vmem>>, vector<8x32xf32>,
    %c0_82 = arith.constant 0 : index
    %c160 = arith.constant 160 : index
    %291 = vector.load %arg7[%c0_82, %c160] : memref<8x512xf32, #tpu.memory_space<vmem>>, vector<8x32xf32>
    tpu.vector_store %arg7[%c0_82, %c160], %288 {strides = array<i32>} : memref<8x512xf32, #tpu.memory_space<vmem>>, vector<8x32xf32>,
    %292 = arith.truncf %289 : vector<8x64xf32> to vector<8x64xbf16>
    %cst_83 = arith.constant dense<0.000000e+00> : vector<8x256xf32>
    %293 = tpu.matmul %292, %7, %cst_83 {dimension_numbers = #tpu.dot_dimension_numbers<[1], [0], [0], [1], [0, 0, 1, 1], [], []>} : vector<8x64xbf16>, vector<64x256xbf16>, vector<8x256xf32> -> vector<8x256xf32>
    %294 = vector.extract_strided_slice %293 {offsets = [0, 0], sizes = [8, 128], strides = [1, 1]} : vector<8x256xf32> to vector<8x128xf32>
    %c48_84 = arith.constant 48 : index
    %c0_85 = arith.constant 0 : index
    %295 = vector.load %arg8[%c48_84, %c0_85] : memref<64x256xf32, #tpu.memory_space<vmem>>, vector<8x128xf32>
    %296 = arith.addf %294, %295 : vector<8x128xf32>
    %297 = arith.negf %296 : vector<8x128xf32>
    %298 = math.exp %297 : vector<8x128xf32>
    %cst_86 = arith.constant 1.000000e+00 : f32
    %299 = vector.broadcast %cst_86 : f32 to vector<8x128xf32>
    %300 = arith.addf %299, %298 : vector<8x128xf32>
    %301 = arith.divf %299, %300 : vector<8x128xf32>
    %302 = vector.extract_strided_slice %301 {offsets = [0, 0], sizes = [8, 32], strides = [1, 1]} : vector<8x128xf32> to vector<8x32xf32>
    %303 = vector.extract_strided_slice %301 {offsets = [0, 32], sizes = [8, 32], strides = [1, 1]} : vector<8x128xf32> to vector<8x32xf32>
    %304 = vector.extract_strided_slice %301 {offsets = [0, 64], sizes = [8, 32], strides = [1, 1]} : vector<8x128xf32> to vector<8x32xf32>
    %cst_87 = arith.constant 2.000000e+00 : f32
    %305 = vector.broadcast %cst_87 : f32 to vector<8x32xf32>
    %306 = arith.mulf %305, %304 : vector<8x32xf32>
    %cst_88 = arith.constant 1.000000e+00 : f32
    %307 = vector.broadcast %cst_88 : f32 to vector<8x32xf32>
    %308 = arith.subf %306, %307 : vector<8x32xf32>
    %309 = vector.extract_strided_slice %301 {offsets = [0, 96], sizes = [8, 32], strides = [1, 1]} : vector<8x128xf32> to vector<8x32xf32>
    %310 = arith.mulf %303, %265 : vector<8x32xf32>
    %311 = arith.mulf %302, %308 : vector<8x32xf32>
    %312 = arith.addf %310, %311 : vector<8x32xf32>
    %313 = math.tanh %312 : vector<8x32xf32>
    %314 = arith.mulf %309, %313 : vector<8x32xf32>
    %315 = vector.extract_strided_slice %293 {offsets = [0, 128], sizes = [8, 128], strides = [1, 1]} : vector<8x256xf32> to vector<8x128xf32>
    %c8_89 = arith.constant 8 : index
    %c128_90 = arith.constant 128 : index
    %316 = vector.load %arg8[%c8_89, %c128_90] : memref<64x256xf32, #tpu.memory_space<vmem>>, vector<8x128xf32>
    %317 = arith.addf %315, %316 : vector<8x128xf32>
    %318 = arith.negf %317 : vector<8x128xf32>
    %319 = math.exp %318 : vector<8x128xf32>
    %cst_91 = arith.constant 1.000000e+00 : f32
    %320 = vector.broadcast %cst_91 : f32 to vector<8x128xf32>
    %321 = arith.addf %320, %319 : vector<8x128xf32>
    %322 = arith.divf %320, %321 : vector<8x128xf32>
    %323 = vector.extract_strided_slice %322 {offsets = [0, 0], sizes = [8, 32], strides = [1, 1]} : vector<8x128xf32> to vector<8x32xf32>
    %324 = vector.extract_strided_slice %322 {offsets = [0, 32], sizes = [8, 32], strides = [1, 1]} : vector<8x128xf32> to vector<8x32xf32>
    %325 = vector.extract_strided_slice %322 {offsets = [0, 64], sizes = [8, 32], strides = [1, 1]} : vector<8x128xf32> to vector<8x32xf32>
    %cst_92 = arith.constant 2.000000e+00 : f32
    %326 = vector.broadcast %cst_92 : f32 to vector<8x32xf32>
    %327 = arith.mulf %326, %325 : vector<8x32xf32>
    %cst_93 = arith.constant 1.000000e+00 : f32
    %328 = vector.broadcast %cst_93 : f32 to vector<8x32xf32>
    %329 = arith.subf %327, %328 : vector<8x32xf32>
    %330 = vector.extract_strided_slice %322 {offsets = [0, 96], sizes = [8, 32], strides = [1, 1]} : vector<8x128xf32> to vector<8x32xf32>
    %331 = arith.mulf %324, %286 : vector<8x32xf32>
    %332 = arith.mulf %323, %329 : vector<8x32xf32>
    %333 = arith.addf %331, %332 : vector<8x32xf32>
    %334 = math.tanh %333 : vector<8x32xf32>
    %335 = arith.mulf %330, %334 : vector<8x32xf32>
    %336 = tpu.concatenate %314, %335 in 1 : vector<8x32xf32>, vector<8x32xf32> -> vector<8x64xf32>
    %c0_94 = arith.constant 0 : index
    %c384 = arith.constant 384 : index
    %337 = vector.load %arg7[%c0_94, %c384] : memref<8x512xf32, #tpu.memory_space<vmem>>, vector<8x32xf32>
    tpu.vector_store %arg7[%c0_94, %c384], %314 {strides = array<i32>} : memref<8x512xf32, #tpu.memory_space<vmem>>, vector<8x32xf32>,
    %c0_95 = arith.constant 0 : index
    %c96 = arith.constant 96 : index
    %338 = vector.load %arg7[%c0_95, %c96] : memref<8x512xf32, #tpu.memory_space<vmem>>, vector<8x32xf32>
    tpu.vector_store %arg7[%c0_95, %c96], %335 {strides = array<i32>} : memref<8x512xf32, #tpu.memory_space<vmem>>, vector<8x32xf32>,
    %339 = arith.truncf %336 : vector<8x64xf32> to vector<8x64xbf16>
    %cst_96 = arith.constant dense<0.000000e+00> : vector<8x256xf32>
    %340 = tpu.matmul %339, %7, %cst_96 {dimension_numbers = #tpu.dot_dimension_numbers<[1], [0], [0], [1], [0, 0, 1, 1], [], []>} : vector<8x64xbf16>, vector<64x256xbf16>, vector<8x256xf32> -> vector<8x256xf32>
    %341 = vector.extract_strided_slice %340 {offsets = [0, 0], sizes = [8, 128], strides = [1, 1]} : vector<8x256xf32> to vector<8x128xf32>
    %c56_97 = arith.constant 56 : index
    %c0_98 = arith.constant 0 : index
    %342 = vector.load %arg8[%c56_97, %c0_98] : memref<64x256xf32, #tpu.memory_space<vmem>>, vector<8x128xf32>
    %343 = arith.addf %341, %342 : vector<8x128xf32>
    %344 = arith.negf %343 : vector<8x128xf32>
    %345 = math.exp %344 : vector<8x128xf32>
    %cst_99 = arith.constant 1.000000e+00 : f32
    %346 = vector.broadcast %cst_99 : f32 to vector<8x128xf32>
    %347 = arith.addf %346, %345 : vector<8x128xf32>
    %348 = arith.divf %346, %347 : vector<8x128xf32>
    %349 = vector.extract_strided_slice %348 {offsets = [0, 0], sizes = [8, 32], strides = [1, 1]} : vector<8x128xf32> to vector<8x32xf32>
    %350 = vector.extract_strided_slice %348 {offsets = [0, 32], sizes = [8, 32], strides = [1, 1]} : vector<8x128xf32> to vector<8x32xf32>
    %351 = vector.extract_strided_slice %348 {offsets = [0, 64], sizes = [8, 32], strides = [1, 1]} : vector<8x128xf32> to vector<8x32xf32>
    %cst_100 = arith.constant 2.000000e+00 : f32
    %352 = vector.broadcast %cst_100 : f32 to vector<8x32xf32>
    %353 = arith.mulf %352, %351 : vector<8x32xf32>
    %cst_101 = arith.constant 1.000000e+00 : f32
    %354 = vector.broadcast %cst_101 : f32 to vector<8x32xf32>
    %355 = arith.subf %353, %354 : vector<8x32xf32>
    %356 = vector.extract_strided_slice %348 {offsets = [0, 96], sizes = [8, 32], strides = [1, 1]} : vector<8x128xf32> to vector<8x32xf32>
    %357 = arith.mulf %350, %312 : vector<8x32xf32>
    %358 = arith.mulf %349, %355 : vector<8x32xf32>
    %359 = arith.addf %357, %358 : vector<8x32xf32>
    %360 = math.tanh %359 : vector<8x32xf32>
    %361 = arith.mulf %356, %360 : vector<8x32xf32>
    %362 = vector.extract_strided_slice %340 {offsets = [0, 128], sizes = [8, 128], strides = [1, 1]} : vector<8x256xf32> to vector<8x128xf32>
    %c0_102 = arith.constant 0 : index
    %c128_103 = arith.constant 128 : index
    %363 = vector.load %arg8[%c0_102, %c128_103] : memref<64x256xf32, #tpu.memory_space<vmem>>, vector<8x128xf32>
    %364 = arith.addf %362, %363 : vector<8x128xf32>
    %365 = arith.negf %364 : vector<8x128xf32>
    %366 = math.exp %365 : vector<8x128xf32>
    %cst_104 = arith.constant 1.000000e+00 : f32
    %367 = vector.broadcast %cst_104 : f32 to vector<8x128xf32>
    %368 = arith.addf %367, %366 : vector<8x128xf32>
    %369 = arith.divf %367, %368 : vector<8x128xf32>
    %370 = vector.extract_strided_slice %369 {offsets = [0, 0], sizes = [8, 32], strides = [1, 1]} : vector<8x128xf32> to vector<8x32xf32>
    %371 = vector.extract_strided_slice %369 {offsets = [0, 32], sizes = [8, 32], strides = [1, 1]} : vector<8x128xf32> to vector<8x32xf32>
    %372 = vector.extract_strided_slice %369 {offsets = [0, 64], sizes = [8, 32], strides = [1, 1]} : vector<8x128xf32> to vector<8x32xf32>
    %cst_105 = arith.constant 2.000000e+00 : f32
    %373 = vector.broadcast %cst_105 : f32 to vector<8x32xf32>
    %374 = arith.mulf %373, %372 : vector<8x32xf32>
    %cst_106 = arith.constant 1.000000e+00 : f32
    %375 = vector.broadcast %cst_106 : f32 to vector<8x32xf32>
    %376 = arith.subf %374, %375 : vector<8x32xf32>
    %377 = vector.extract_strided_slice %369 {offsets = [0, 96], sizes = [8, 32], strides = [1, 1]} : vector<8x128xf32> to vector<8x32xf32>
    %378 = arith.mulf %371, %333 : vector<8x32xf32>
    %379 = arith.mulf %370, %376 : vector<8x32xf32>
    %380 = arith.addf %378, %379 : vector<8x32xf32>
    %381 = math.tanh %380 : vector<8x32xf32>
    %382 = arith.mulf %377, %381 : vector<8x32xf32>
    %c0_107 = arith.constant 0 : index
    %c448 = arith.constant 448 : index
    %383 = vector.load %arg7[%c0_107, %c448] : memref<8x512xf32, #tpu.memory_space<vmem>>, vector<8x32xf32>
    tpu.vector_store %arg7[%c0_107, %c448], %361 {strides = array<i32>} : memref<8x512xf32, #tpu.memory_space<vmem>>, vector<8x32xf32>,
    %c0_108 = arith.constant 0 : index
    %c32_109 = arith.constant 32 : index
    %384 = vector.load %arg7[%c0_108, %c32_109] : memref<8x512xf32, #tpu.memory_space<vmem>>, vector<8x32xf32>
    tpu.vector_store %arg7[%c0_108, %c32_109], %382 {strides = array<i32>} : memref<8x512xf32, #tpu.memory_space<vmem>>, vector<8x32xf32>,
    %c0_110 = arith.constant 0 : index
    %c0_111 = arith.constant 0 : index
    %385 = vector.load %arg7[%c0_110, %c0_111] : memref<8x512xf32, #tpu.memory_space<vmem>>, vector<8x512xf32>
    %386 = arith.truncf %385 : vector<8x512xf32> to vector<8x512xbf16>
    %c0_112 = arith.constant 0 : index
    %c0_113 = arith.constant 0 : index
    %387 = vector.load %arg4[%c0_112, %c0_113] : memref<512x5xbf16, #tpu.memory_space<vmem>>, vector<512x5xbf16>
    %cst_114 = arith.constant dense<0.000000e+00> : vector<8x5xf32>
    %388 = tpu.matmul %386, %387, %cst_114 {dimension_numbers = #tpu.dot_dimension_numbers<[1], [0], [0], [1], [0, 0, 1, 1], [], []>} : vector<8x512xbf16>, vector<512x5xbf16>, vector<8x5xf32> -> vector<8x5xf32>
    %c0_115 = arith.constant 0 : index
    %c0_116 = arith.constant 0 : index
    %389 = vector.load %arg5[%c0_115, %c0_116] : memref<1x5xf32, #tpu.memory_space<vmem>>, vector<1x5xf32>
    %390 = vector.broadcast %389 : vector<1x5xf32> to vector<8x5xf32>
    %391 = arith.addf %388, %390 : vector<8x5xf32>
    %c0_117 = arith.constant 0 : index
    %c0_118 = arith.constant 0 : index
    %392 = vector.load %arg6[%c0_117, %c0_118] : memref<8x5xf32, #tpu.memory_space<vmem>>, vector<8x5xf32>
    tpu.vector_store %arg6[%c0_117, %c0_118], %391 {strides = array<i32>} : memref<8x5xf32, #tpu.memory_space<vmem>>, vector<8x5xf32>,
    return
  }
}

</mosaic_0001>

<bundles_post_ra>
// kernel: lstm_forward.1
= control target key start
LH: loop header
LB: loop body
LE: loop exit
PB: predicated region body
PF: predicated region fallthrough
CT: control target
= control target key end

     0   :  { %vm83_vm0 = vcmask 1043456   ;;  %v1761_v1 = vmov 0   ;;  %vm70_vm1 = vcmask 64512   ;;  %v35_v17 = vlaneseq  ;;  %s1764_s23 = smov 96   ;;  %s2220_s1 = inlined_call_operand.vmem [shape: bf16[8,256], index: 1, kind: input, shape index: {}]   ;;  %s2221_s2 = inlined_call_operand.vmem [shape: bf16[64,256], index: 2, kind: input, shape index: {}]   ;;  %s2222_s0 = inlined_call_operand.vmem [shape: bf16[64,8], index: 0, kind: input, shape index: {}]   ;;  %s2223_s3 = inlined_call_operand.vmem [shape: f32[1,256], index: 3, kind: input, shape index: {}]   ;;  %s2224_s4 = inlined_call_operand.vmem [shape: bf16[512,5], index: 4, kind: input, shape index: {}]   ;;  %s2225_s5 = inlined_call_operand.vmem [shape: f32[1,5], index: 5, kind: input, shape index: {}]   ;;  %s2226_s6 = inlined_call_operand.vmem [shape: f32[8,5], index: 6, kind: output, shape index: {}]  }
   0x1   :  { %v32_v0 = vld [vmem:[%s2220_s1] sm:$0xff]  ;;  %122 = vmatprep.mubr.bf16.mxu0 %v1761_v1  ;;  %263 = vmatprep.mubr.bf16.mxu1 %v1761_v1  ;;  %v1808_v3 = vld [vmem:[%s2221_s2 + $0x34] ss:$8 sps:$4 sm:$0xff]   ;;  %v1813_v5 = vld [vmem:[%s2221_s2 + $0x30] ss:$8 sps:$4 sm:$0xff]   ;;  %vm337_vm2 = vcmask 1048320  }
   0x2   :  { %v1481_v2 = vcombine.high %v32_v0, %v32_v0  ;;  %v1480_v4 = vcombine.low %v32_v0, %v32_v0  ;;  %239 = vmatprep.subr.bf16.mxu1 %v1808_v3  ;;  %v1620_v7 = vld [vmem:[%s2222_s0] sm:$0xff]   ;;  %v1834_v10 = vld [vmem:[%s2221_s2 + $0x14] ss:$8 sps:$4 sm:$0xff]   ;;  %v1842_v11 = vld [vmem:[%s2221_s2 + $0x10] ss:$8 sps:$4 sm:$0xff]   ;;  %v36_v18 = vshrl.u32 %v35_v17, 7 }
   0x3   :  { %v1822_v8 = vld [vmem:[%s2221_s2 + $0x24] ss:$8 sps:$4 sm:$0xff]   ;;  %240 = vmatpush1.bf16.msra.mxu1 %v1813_v5  ;;  %v1828_v9 = vld [vmem:[%s2221_s2 + $0x20] ss:$8 sps:$4 sm:$0xff]   ;;  %v1631_v15 = vld [vmem:[%s2222_s0 + $0x10] sm:$0xff]   ;;  %vm334_vm3 = vcmask 261120  }
   0x4   :  { %1482 = vmatprep.subr.msk.bf16.mxu0 %vm83_vm0, %v1481_v2  ;;  %v85_v6 = vsel %vm83_vm0, %v1480_v4, 0  ;;  %241 = vmatprep.subr.bf16.mxu1 %v1822_v8  ;;  %v1849_v12 = vld [vmem:[%s2221_s2 + $0x4] ss:$8 sps:$4 sm:$0xff]   ;;  %v1860_v14 = vld [vmem:[%s2221_s2] ss:$8 sps:$4 sm:$0xff]   ;;  %v1632_v16 = vld [vmem:[%s2222_s0 + $0x18] sm:$0xff]  }
   0x5   :  { %105 = vmatpush1.bf16.msra.mxu0 %v85_v6  ;;  %v1627_v13 = vld [vmem:[%s2222_s0 + $0x8] sm:$0xff]   ;;  %v41_v19 = vsub.s32 1, %v36_v18  ;;  %v33_v20 = vld [vmem:[%s2223_s3] sm:$0x3]  ;;  %v37_v21 = vsub.s32 0, %v36_v18  ;;  %s1762_s0 = smov 64  }
   0x6   :  { %466 = vmatprep.subr.bf16.mxu0 %v1808_v3  ;;  %s1763_s3 = smov 32   ;;  %vm227_vm4 = vcmask 523264   ;;  %vm452_vm5 = vcmask 523520   ;;  %vm450_vm6 = vcmask 785920   ;;  %vm1470_vm7 = vcmask 39936  }
   0x7   :  { %242 = vmatpush1.bf16.msra.mxu1 %v1828_v9  ;;  %v42_v22 = vrot.slane %v33_v20, %v41_v19  ;;  %v38_v25 = vrot.slane %v33_v20, %v37_v21 }
   0x8   :  { %1483 = vmatmul.mubr.msk.bf16.vlgmr.msra.gmra.mxu0 %vm70_vm1, %v1620_v7  ;;  %243 = vmatprep.subr.bf16.mxu1 %v1834_v10 }
   0x9   :  { %132 = vmatprep.mubr.bf16.mxu0 %v1761_v1  ;;  %467 = vmatpush1.bf16.msra.mxu0 %v1813_v5 }
   0xa   :  { %468 = vmatprep.subr.bf16.mxu0 %v1822_v8 }
   0xb   :  { %244 = vmatpush1.bf16.msra.mxu1 %v1842_v11 }
   0xc   :  { %245 = vmatprep.subr.bf16.mxu1 %v1849_v12 }
   0xd   :  { %469 = vmatpush1.bf16.msra.mxu0 %v1828_v9 }
   0xe   :  { %470 = vmatprep.subr.bf16.mxu0 %v1834_v10 }
   0xf   :  { %246 = vmatpush1.bf16.msra.mxu1 %v1860_v14 }
  0x10   :  { %1484 = vmatmul.mubr.msk.bf16.gmra.mxu0 %vm70_vm1, %v1627_v13  ;;  %351 = vmatprep.subr.bf16.mxu1 %v1808_v3 }
  0x11   :  { %142 = vmatprep.mubr.bf16.mxu0 %v1761_v1  ;;  %471 = vmatpush1.bf16.msra.mxu0 %v1842_v11 }
  0x12   :  { %472 = vmatprep.subr.bf16.mxu0 %v1849_v12  ;;  %264 = vmatmul.mubr.bf16.vlgmr.msra.gmra.mxu1 %v1761_v1 }
  0x13   :  { %352 = vmatpush1.bf16.msra.mxu1 %v1813_v5  ;;  %375 = vmatprep.mubr.bf16.mxu1 %v1761_v1 }
  0x14   :  { %353 = vmatprep.subr.bf16.mxu1 %v1822_v8 }
  0x15   :  { %473 = vmatpush1.bf16.msra.mxu0 %v1860_v14 }
  0x16   :  { %689 = vmatprep.subr.bf16.mxu0 %v1808_v3 }
  0x17   :  { %354 = vmatpush1.bf16.msra.mxu1 %v1828_v9 }
  0x18   :  { %1485 = vmatmul.mubr.msk.bf16.gmra.mxu0 %vm70_vm1, %v1631_v15  ;;  %355 = vmatprep.subr.bf16.mxu1 %v1834_v10 }
  0x19   :  { %152 = vmatprep.mubr.bf16.mxu0 %v1761_v1 }
  0x1b   :  { %356 = vmatpush1.bf16.msra.mxu1 %v1842_v11 }
  0x1c   :  { %357 = vmatprep.subr.bf16.mxu1 %v1849_v12 }
  0x1f   :  { %358 = vmatpush1.bf16.msra.mxu1 %v1860_v14 }
  0x20   :  { %1486 = vmatmul.mubr.msk.bf16.gmra.mxu0 %vm70_vm1, %v1632_v16  ;;  %576 = vmatprep.subr.bf16.mxu1 %v1808_v3 }
  0x21   :  { %490 = vmatprep.mubr.bf16.mxu0 %v1761_v1 }
  0xc8   :  { %v124_v23 = vpop.f32.mrf.mxu0 }
  0xc9   :  { %v125_v34 = vadd.f32 %v124_v23, %v38_v25 }
  0xca   :  { %v126_v24 = vpop.f32.mrf.mxu0 }
  0xcb   :  { %v1896_v26 = vadd.f32 %v126_v24, %v42_v22 }
  0xcc   :  { %v128_v27 = vpop.f32.mrf.mxu0 }
  0xcd   :  { %v1898_v28 = vadd.f32 %v128_v27, %v38_v25 }
  0xce   :  { %v130_v29 = vpop.f32.mrf.mxu0 }
  0xcf   :  { %v1900_v30 = vadd.f32 %v130_v29, %v42_v22 }
  0xd0   :  { %v134_v31 = vpop.f32.mrf.mxu0 }
  0xd1   :  { %v1902_v32 = vadd.f32 %v134_v31, %v38_v25 }
  0xd2   :  { %v136_v33 = vpop.f32.mrf.mxu0  ;;  %v265_v37 = vpop.f32.mrf.mxu1 }
  0xd3   :  { %v1904_v35 = vadd.f32 %v136_v33, %v42_v22  ;;  %v273_v39 = vadd.f32 %v265_v37, %v125_v34 }
  0xd4   :  { %v138_v36 = vpop.f32.mrf.mxu0  ;;  %v267_v41 = vpop.f32.mrf.mxu1 }
  0xd5   :  { %v1906_v38 = vadd.f32 %v138_v36, %v38_v25  ;;  %v1495_v42 = vmul.f32 -1.442695, %v273_v39 }
  0xd6   :  { %v140_v40 = vpop.f32.mrf.mxu0  ;;  %v269_v45 = vpop.f32.mrf.mxu1 }
  0xd7   :  { %v1908_v43 = vadd.f32 %v140_v40, %v42_v22  ;;  %1665 = vpow2.f32 %v1495_v42 }
  0xd8   :  { %v144_v44 = vpop.f32.mrf.mxu0  ;;  %v270_v48 = vpop.f32.mrf.mxu1 }
  0xd9   :  { %v1910_v46 = vadd.f32 %v144_v44, %v38_v25 }
  0xda   :  { %v146_v47 = vpop.f32.mrf.mxu0 }
  0xdb   :  { %v1912_v49 = vadd.f32 %v146_v47, %v42_v22 }
  0xdc   :  { %v148_v50 = vpop.f32.mrf.mxu0 }
  0xdd   :  { %v1914_v51 = vadd.f32 %v148_v50, %v38_v25 }
  0xde   :  { %v150_v52 = vpop.f32.mrf.mxu0 }
  0xdf   :  { %v1916_v53 = vadd.f32 %v150_v52, %v42_v22 }
  0xe0   :  { %v154_v54 = vpop.f32.mrf.mxu0 }
  0xe1   :  { %v1918_v55 = vadd.f32 %v154_v54, %v38_v25 }
  0xe2   :  { %v156_v56 = vpop.f32.mrf.mxu0 }
  0xe3   :  { %v1920_v57 = vadd.f32 %v156_v56, %v42_v22 }
  0xe4   :  { %v158_v58 = vpop.f32.mrf.mxu0  ;;  %v1666_v60 = vpop.eup %1665 }
  0xe5   :  { %v1922_v59 = vadd.f32 %v158_v58, %v38_v25  ;;  %v277_v62 = vadd.f32 1.0, %v1666_v60 }
  0xe6   :  { %v160_v61 = vpop.f32.mrf.mxu0 }
  0xe7   :  { %v161_v63 = vadd.f32 %v160_v61, %v42_v22  ;;  %1667 = vrcp.f32 %v277_v62 }
  0xe9   :  { %v300_v0 = vadd.f32 %v267_v41, %v161_v63 }
  0xeb   :  { %v1497_v2 = vmul.f32 -1.442695, %v300_v0 }
  0xed   :  { %1669 = vpow2.f32 %v1497_v2 }
  0xf4   :  { %v1668_v4 = vpop.eup %1667 }
  0xf5   :  { %v280_v6 = vmul.f32 2.0, %v1668_v4  ;;  %v282_v23 = vmul.f32 0.0, %v1668_v4 }
  0xf7   :  { %v1496_v7 = vadd.f32 -1.0, %v280_v6 }
  0xf9   :  { %284 = vrot.lane.b32.xlu0 %v1496_v7, %s1762_s0 }
  0xfa   :  { %v1670_v13 = vpop.eup %1669 }
  0xfb   :  { %v304_v15 = vadd.f32 1.0, %v1670_v13 }
  0xfd   :  { %1671 = vrcp.f32 %v304_v15 }
 0x10a   :  { %v1672_v16 = vpop.eup %1671 }
 0x10b   :  { %v307_v17 = vmul.f32 2.0, %v1672_v16  ;;  %v309_v29 = vmul.f32 0.0, %v1672_v16 }
 0x10d   :  { %v1498_v18 = vadd.f32 -1.0, %v307_v17 }
 0x10f   :  { %311 = vrot.lane.b32.xlu0 %v1498_v18, %s1762_s0 }
 0x16b   :  { %v285_v19 = vpop.permute.xlu0 %284 }
 0x16c   :  { %v287_v20 = vmul.f32 %v1668_v4, %v285_v19 }
 0x16e   :  { %289 = vrot.lane.b32.xlu1 %v287_v20, %s1763_s3 }
 0x181   :  { %v312_v21 = vpop.permute.xlu0 %311 }
 0x182   :  { %v314_v22 = vmul.f32 %v1672_v16, %v312_v21 }
 0x184   :  { %316 = vrot.lane.b32.xlu1 %v314_v22, %s1763_s3 }
 0x1e0   :  { %v290_v24 = vpop.permute.xlu1 %289 }
 0x1e1   :  { %v1928_v25 = vadd.f32 %v290_v24, %v282_v23 }
 0x1e3   :  { %1673 = vtanh.f32 %v1928_v25 }
 0x1f0   :  { %v1674_v27 = vpop.eup %1673 }
 0x1f1   :  { %295 = vrot.lane.b32.xlu0 %v1674_v27, %s1762_s0 }
 0x1f6   :  { %v317_v31 = vpop.permute.xlu1 %316 }
 0x1f7   :  { %v319_v33 = vadd.f32 %v317_v31, %v309_v29 }
 0x1f9   :  { %1675 = vtanh.f32 %v319_v33 }
 0x206   :  { %v1676_v34 = vpop.eup %1675 }
 0x207   :  { %322 = vrot.lane.b32.xlu1 %v1676_v34, %s1762_s0 }
 0x263   :  { %v296_v36 = vpop.permute.xlu0 %295 }
 0x264   :  { %v298_v37 = vmul.f32 %v1668_v4, %v296_v36 }
 0x266   :  { %327 = vrot.lane.b32.xlu0 %v298_v37, %s1763_s3 }
 0x279   :  { %v323_v39 = vpop.permute.xlu1 %322 }
 0x27a   :  { %v325_v40 = vmul.f32 %v1672_v16, %v323_v39 }
 0x27c   :  { %338 = vst.msk [vmem:[#allocation2 + $0x18] sm:$0xff] %vm337_vm2, %v325_v40  ;;  %331 = vrot.lane.b32.xlu1 %v325_v40, %s1762_s0 }
 0x2d8   :  { %v328_v41 = vpop.permute.xlu0 %327 }
 0x2d9   :  { %336 = vst.msk [vmem:[#allocation2] sm:$0xff] %vm334_vm3, %v328_v41 }
 0x2ee   :  { %v332_v42 = vpop.permute.xlu1 %331 }
 0x2ef   :  { %v335_v44 = vsel %vm334_vm3, %v328_v41, %v332_v42 }
 0x2f0   :  { %v339_v45 = vpack.c.bf16 %v335_v44, %v335_v44 }
 0x2f2   :  { %1499 = vmatmul.mubr.msk.bf16.vlgmr.msra.gmra.mxu1 %vm227_vm4, %v339_v45 }
 0x2f3   :  { %577 = vmatpush1.bf16.msra.mxu1 %v1813_v5  ;;  %600 = vmatprep.mubr.bf16.mxu1 %v1761_v1 }
 0x2f4   :  { %578 = vmatprep.subr.bf16.mxu1 %v1822_v8 }
 0x2f7   :  { %579 = vmatpush1.bf16.msra.mxu1 %v1828_v9 }
 0x2f8   :  { %580 = vmatprep.subr.bf16.mxu1 %v1834_v10 }
 0x2fb   :  { %581 = vmatpush1.bf16.msra.mxu1 %v1842_v11 }
 0x2fc   :  { %582 = vmatprep.subr.bf16.mxu1 %v1849_v12 }
 0x2ff   :  { %583 = vmatpush1.bf16.msra.mxu1 %v1860_v14 }
 0x300   :  { %799 = vmatprep.subr.bf16.mxu1 %v1808_v3 }
 0x3b2   :  { %v377_v47 = vpop.f32.mrf.mxu1 }
 0x3b3   :  { %v385_v48 = vadd.f32 %v377_v47, %v1898_v28 }
 0x3b4   :  { %v379_v50 = vpop.f32.mrf.mxu1 }
 0x3b5   :  { %v1500_v52 = vmul.f32 -1.442695, %v385_v48  ;;  %v412_v54 = vadd.f32 %v379_v50, %v1920_v57 }
 0x3b6   :  { %v381_v56 = vpop.f32.mrf.mxu1 }
 0x3b7   :  { %1677 = vpow2.f32 %v1500_v52  ;;  %v1502_v58 = vmul.f32 -1.442695, %v412_v54 }
 0x3b8   :  { %v382_v60 = vpop.f32.mrf.mxu1 }
 0x3b9   :  { %1679 = vpow2.f32 %v1502_v58 }
 0x3c4   :  { %v1678_v61 = vpop.eup %1677 }
 0x3c5   :  { %v389_v62 = vadd.f32 1.0, %v1678_v61 }
 0x3c6   :  { %v1680_v63 = vpop.eup %1679 }
 0x3c7   :  { %1681 = vrcp.f32 %v389_v62  ;;  %v416_v0 = vadd.f32 1.0, %v1680_v63 }
 0x3c9   :  { %1683 = vrcp.f32 %v416_v0 }
 0x3d4   :  { %v1682_v2 = vpop.eup %1681 }
 0x3d5   :  { %v392_v4 = vmul.f32 2.0, %v1682_v2  ;;  %v394_v18 = vmul.f32 %v1682_v2, %v1928_v25 }
 0x3d6   :  { %v1684_v6 = vpop.eup %1683 }
 0x3d7   :  { %v1501_v7 = vadd.f32 -1.0, %v392_v4  ;;  %v419_v28 = vmul.f32 2.0, %v1684_v6  ;;  %v421_v21 = vmul.f32 %v1684_v6, %v319_v33 }
 0x3d9   :  { %396 = vrot.lane.b32.xlu0 %v1501_v7, %s1762_s0  ;;  %v1503_v13 = vadd.f32 -1.0, %v419_v28 }
 0x3db   :  { %423 = vrot.lane.b32.xlu1 %v1503_v13, %s1762_s0 }
 0x44b   :  { %v397_v57 = vpop.permute.xlu0 %396 }
 0x44c   :  { %v399_v15 = vmul.f32 %v1682_v2, %v397_v57 }
 0x44d   :  { %v424_v16 = vpop.permute.xlu1 %423 }
 0x44e   :  { %v426_v17 = vmul.f32 %v1684_v6, %v424_v16  ;;  %401 = vrot.lane.b32.xlu0 %v399_v15, %s1763_s3 }
 0x450   :  { %428 = vrot.lane.b32.xlu1 %v426_v17, %s1763_s3 }
 0x4c0   :  { %v402_v19 = vpop.permute.xlu0 %401 }
 0x4c1   :  { %v404_v20 = vadd.f32 %v402_v19, %v394_v18 }
 0x4c2   :  { %v429_v22 = vpop.permute.xlu1 %428 }
 0x4c3   :  { %1685 = vtanh.f32 %v404_v20  ;;  %v431_v23 = vadd.f32 %v429_v22, %v421_v21 }
 0x4c5   :  { %1687 = vtanh.f32 %v431_v23 }
 0x4d0   :  { %v1686_v24 = vpop.eup %1685 }
 0x4d1   :  { %407 = vrot.lane.b32.xlu0 %v1686_v24, %s1762_s0 }
 0x4d2   :  { %v1688_v27 = vpop.eup %1687 }
 0x4d3   :  { %434 = vrot.lane.b32.xlu1 %v1688_v27, %s1762_s0 }
 0x543   :  { %v408_v29 = vpop.permute.xlu0 %407 }
 0x544   :  { %v1957_v31 = vmul.f32 %v1682_v2, %v408_v29 }
 0x545   :  { %v435_v34 = vpop.permute.xlu1 %434 }
 0x546   :  { %v437_v36 = vmul.f32 %v1684_v6, %v435_v34  ;;  %439 = vrot.lane.b32.xlu0 %v1957_v31, %s1763_s3 }
 0x548   :  { %443 = vrot.lane.b32.xlu1 %v437_v36, %s1762_s0 }
 0x5b8   :  { %v440_v25 = vpop.permute.xlu0 %439 }
 0x5ba   :  { %v444_v33 = vpop.permute.xlu1 %443 }
 0x5bb   :  { %v446_v37 = vsel %vm334_vm3, %v440_v25, %v444_v33  ;;  %453 = vst.msk [vmem:[#allocation2 + $0x18] sm:$0xff] %vm452_vm5, %v444_v33 }
 0x5bc   :  { %v454_v39 = vpack.c.bf16 %v446_v37, %v446_v37 }
 0x5be   :  { %1504 = vmatmul.mubr.msk.bf16.vlgmr.msra.gmra.mxu0 %vm227_vm4, %v454_v39 }
 0x5bf   :  { %690 = vmatpush1.bf16.msra.mxu0 %v1813_v5  ;;  %713 = vmatprep.mubr.bf16.mxu0 %v1761_v1 }
 0x5c0   :  { %691 = vmatprep.subr.bf16.mxu0 %v1822_v8 }
 0x5c3   :  { %692 = vmatpush1.bf16.msra.mxu0 %v1828_v9 }
 0x5c4   :  { %693 = vmatprep.subr.bf16.mxu0 %v1834_v10 }
 0x5c7   :  { %694 = vmatpush1.bf16.msra.mxu0 %v1842_v11 }
 0x5c8   :  { %695 = vmatprep.subr.bf16.mxu0 %v1849_v12 }
 0x5cb   :  { %696 = vmatpush1.bf16.msra.mxu0 %v1860_v14 }
 0x5cc   :  { %912 = vmatprep.subr.bf16.mxu0 %v1808_v3 }
 0x67e   :  { %v492_v40 = vpop.f32.mrf.mxu0 }
 0x67f   :  { %v500_v41 = vadd.f32 %v492_v40, %v1902_v32 }
 0x680   :  { %v494_v42 = vpop.f32.mrf.mxu0 }
 0x681   :  { %v1505_v44 = vmul.f32 -1.442695, %v500_v41  ;;  %v527_v45 = vadd.f32 %v494_v42, %v1916_v53 }
 0x682   :  { %v496_v47 = vpop.f32.mrf.mxu0 }
 0x683   :  { %1689 = vpow2.f32 %v1505_v44  ;;  %v1507_v48 = vmul.f32 -1.442695, %v527_v45 }
 0x684   :  { %v497_v50 = vpop.f32.mrf.mxu0 }
 0x685   :  { %1691 = vpow2.f32 %v1507_v48 }
 0x690   :  { %v1690_v52 = vpop.eup %1689 }
 0x691   :  { %v504_v54 = vadd.f32 1.0, %v1690_v52 }
 0x692   :  { %v1692_v56 = vpop.eup %1691 }
 0x693   :  { %1693 = vrcp.f32 %v504_v54  ;;  %v531_v58 = vadd.f32 1.0, %v1692_v56 }
 0x695   :  { %1695 = vrcp.f32 %v531_v58 }
 0x6a0   :  { %v1694_v60 = vpop.eup %1693 }
 0x6a1   :  { %v507_v61 = vmul.f32 2.0, %v1694_v60  ;;  %v509_v7 = vmul.f32 %v1694_v60, %v404_v20 }
 0x6a2   :  { %v1696_v62 = vpop.eup %1695 }
 0x6a3   :  { %v1506_v63 = vadd.f32 -1.0, %v507_v61  ;;  %v534_v32 = vmul.f32 2.0, %v1696_v62  ;;  %v536_v57 = vmul.f32 %v1696_v62, %v431_v23 }
 0x6a5   :  { %511 = vrot.lane.b32.xlu0 %v1506_v63, %s1762_s0  ;;  %v1508_v0 = vadd.f32 -1.0, %v534_v32 }
 0x6a7   :  { %538 = vrot.lane.b32.xlu1 %v1508_v0, %s1762_s0 }
 0x717   :  { %v512_v53 = vpop.permute.xlu0 %511 }
 0x718   :  { %v514_v2 = vmul.f32 %v1694_v60, %v512_v53 }
 0x719   :  { %v539_v4 = vpop.permute.xlu1 %538 }
 0x71a   :  { %v541_v6 = vmul.f32 %v1696_v62, %v539_v4  ;;  %516 = vrot.lane.b32.xlu0 %v514_v2, %s1763_s3 }
 0x71c   :  { %543 = vrot.lane.b32.xlu1 %v541_v6, %s1763_s3 }
 0x78c   :  { %v517_v28 = vpop.permute.xlu0 %516 }
 0x78d   :  { %v519_v13 = vadd.f32 %v517_v28, %v509_v7 }
 0x78e   :  { %v544_v15 = vpop.permute.xlu1 %543 }
 0x78f   :  { %1697 = vtanh.f32 %v519_v13  ;;  %v546_v16 = vadd.f32 %v544_v15, %v536_v57 }
 0x791   :  { %1699 = vtanh.f32 %v546_v16 }
 0x79c   :  { %v1698_v17 = vpop.eup %1697 }
 0x79d   :  { %522 = vrot.lane.b32.xlu0 %v1698_v17, %s1762_s0 }
 0x79e   :  { %v1700_v18 = vpop.eup %1699 }
 0x79f   :  { %549 = vrot.lane.b32.xlu1 %v1700_v18, %s1762_s0 }
 0x80f   :  { %v523_v19 = vpop.permute.xlu0 %522 }
 0x810   :  { %v525_v21 = vmul.f32 %v1694_v60, %v523_v19 }
 0x811   :  { %v550_v22 = vpop.permute.xlu1 %549 }
 0x812   :  { %v552_v24 = vmul.f32 %v1696_v62, %v550_v22  ;;  %554 = vrot.lane.b32.xlu0 %v525_v21, %s1763_s3 }
 0x814   :  { %563 = vst.msk [vmem:[#allocation2 + $0x10] sm:$0xff] %vm337_vm2, %v552_v24  ;;  %558 = vrot.lane.b32.xlu1 %v552_v24, %s1762_s0 }
 0x884   :  { %v555_v20 = vpop.permute.xlu0 %554 }
 0x885   :  { %562 = vst.msk [vmem:[#allocation2 + $0x8] sm:$0xff] %vm334_vm3, %v555_v20 }
 0x886   :  { %v559_v23 = vpop.permute.xlu1 %558 }
 0x887   :  { %v561_v27 = vsel %vm334_vm3, %v555_v20, %v559_v23 }
 0x888   :  { %v564_v29 = vpack.c.bf16 %v561_v27, %v561_v27 }
 0x88a   :  { %1509 = vmatmul.mubr.msk.bf16.vlgmr.msra.gmra.mxu1 %vm227_vm4, %v564_v29 }
 0x88b   :  { %800 = vmatpush1.bf16.msra.mxu1 %v1813_v5  ;;  %823 = vmatprep.mubr.bf16.mxu1 %v1761_v1 }
 0x88c   :  { %801 = vmatprep.subr.bf16.mxu1 %v1822_v8 }
 0x88f   :  { %802 = vmatpush1.bf16.msra.mxu1 %v1828_v9 }
 0x890   :  { %803 = vmatprep.subr.bf16.mxu1 %v1834_v10 }
 0x893   :  { %804 = vmatpush1.bf16.msra.mxu1 %v1842_v11 }
 0x894   :  { %805 = vmatprep.subr.bf16.mxu1 %v1849_v12 }
 0x897   :  { %806 = vmatpush1.bf16.msra.mxu1 %v1860_v14 }
 0x898   :  { %1022 = vmatprep.subr.bf16.mxu1 %v1808_v3 }
 0x94a   :  { %v602_v34 = vpop.f32.mrf.mxu1 }
 0x94b   :  { %v610_v36 = vadd.f32 %v602_v34, %v1906_v38 }
 0x94c   :  { %v604_v25 = vpop.f32.mrf.mxu1 }
 0x94d   :  { %v1510_v33 = vmul.f32 -1.442695, %v610_v36  ;;  %v637_v37 = vadd.f32 %v604_v25, %v1912_v49 }
 0x94e   :  { %v606_v39 = vpop.f32.mrf.mxu1 }
 0x94f   :  { %1701 = vpow2.f32 %v1510_v33  ;;  %v1512_v40 = vmul.f32 -1.442695, %v637_v37 }
 0x950   :  { %v607_v41 = vpop.f32.mrf.mxu1 }
 0x951   :  { %1703 = vpow2.f32 %v1512_v40 }
 0x95c   :  { %v1702_v42 = vpop.eup %1701 }
 0x95d   :  { %v614_v44 = vadd.f32 1.0, %v1702_v42 }
 0x95e   :  { %v1704_v45 = vpop.eup %1703 }
 0x95f   :  { %1705 = vrcp.f32 %v614_v44  ;;  %v641_v47 = vadd.f32 1.0, %v1704_v45 }
 0x961   :  { %1707 = vrcp.f32 %v641_v47 }
 0x96c   :  { %v1706_v48 = vpop.eup %1705 }
 0x96d   :  { %v617_v3 = vmul.f32 2.0, %v1706_v48  ;;  %v619_v61 = vmul.f32 %v1706_v48, %v519_v13 }
 0x96e   :  { %v1708_v50 = vpop.eup %1707 }
 0x96f   :  { %v1511_v52 = vadd.f32 -1.0, %v617_v3  ;;  %v644_v38 = vmul.f32 2.0, %v1708_v50  ;;  %v646_v32 = vmul.f32 %v1708_v50, %v546_v16 }
 0x971   :  { %621 = vrot.lane.b32.xlu0 %v1511_v52, %s1762_s0  ;;  %v1513_v54 = vadd.f32 -1.0, %v644_v38 }
 0x973   :  { %648 = vrot.lane.b32.xlu1 %v1513_v54, %s1762_s0 }
 0x9e3   :  { %v622_v49 = vpop.permute.xlu0 %621 }
 0x9e4   :  { %v624_v56 = vmul.f32 %v1706_v48, %v622_v49 }
 0x9e5   :  { %v649_v58 = vpop.permute.xlu1 %648 }
 0x9e6   :  { %v651_v60 = vmul.f32 %v1708_v50, %v649_v58  ;;  %626 = vrot.lane.b32.xlu0 %v624_v56, %s1763_s3 }
 0x9e8   :  { %653 = vrot.lane.b32.xlu1 %v651_v60, %s1763_s3 }
 0xa58   :  { %v627_v62 = vpop.permute.xlu0 %626 }
 0xa59   :  { %v629_v63 = vadd.f32 %v627_v62, %v619_v61 }
 0xa5a   :  { %v654_v0 = vpop.permute.xlu1 %653 }
 0xa5b   :  { %1709 = vtanh.f32 %v629_v63  ;;  %v656_v53 = vadd.f32 %v654_v0, %v646_v32 }
 0xa5d   :  { %1711 = vtanh.f32 %v656_v53 }
 0xa68   :  { %v1710_v2 = vpop.eup %1709 }
 0xa69   :  { %632 = vrot.lane.b32.xlu0 %v1710_v2, %s1762_s0 }
 0xa6a   :  { %v1712_v4 = vpop.eup %1711 }
 0xa6b   :  { %659 = vrot.lane.b32.xlu1 %v1712_v4, %s1762_s0 }
 0xadb   :  { %v633_v6 = vpop.permute.xlu0 %632 }
 0xadc   :  { %v2005_v7 = vmul.f32 %v1706_v48, %v633_v6 }
 0xadd   :  { %v660_v28 = vpop.permute.xlu1 %659 }
 0xade   :  { %v662_v57 = vmul.f32 %v1708_v50, %v660_v28  ;;  %664 = vrot.lane.b32.xlu0 %v2005_v7, %s1763_s3 }
 0xae0   :  { %668 = vrot.lane.b32.xlu1 %v662_v57, %s1762_s0 }
 0xb50   :  { %v665_v13 = vpop.permute.xlu0 %664 }
 0xb52   :  { %v669_v15 = vpop.permute.xlu1 %668 }
 0xb53   :  { %v671_v16 = vsel %vm334_vm3, %v665_v13, %v669_v15  ;;  %676 = vst.msk [vmem:[#allocation2 + $0x10] sm:$0xff] %vm452_vm5, %v669_v15 }
 0xb54   :  { %v677_v17 = vpack.c.bf16 %v671_v16, %v671_v16 }
 0xb56   :  { %1514 = vmatmul.mubr.msk.bf16.vlgmr.msra.gmra.mxu0 %vm227_vm4, %v677_v17 }
 0xb57   :  { %913 = vmatpush1.bf16.msra.mxu0 %v1813_v5  ;;  %936 = vmatprep.mubr.bf16.mxu0 %v1761_v1 }
 0xb58   :  { %914 = vmatprep.subr.bf16.mxu0 %v1822_v8 }
 0xb5b   :  { %915 = vmatpush1.bf16.msra.mxu0 %v1828_v9 }
 0xb5c   :  { %916 = vmatprep.subr.bf16.mxu0 %v1834_v10 }
 0xb5f   :  { %917 = vmatpush1.bf16.msra.mxu0 %v1842_v11 }
 0xb60   :  { %918 = vmatprep.subr.bf16.mxu0 %v1849_v12 }
 0xb63   :  { %919 = vmatpush1.bf16.msra.mxu0 %v1860_v14 }
 0xc16   :  { %v715_v18 = vpop.f32.mrf.mxu0 }
 0xc17   :  { %v723_v19 = vadd.f32 %v715_v18, %v1910_v46 }
 0xc18   :  { %v717_v21 = vpop.f32.mrf.mxu0 }
 0xc19   :  { %v1515_v22 = vmul.f32 -1.442695, %v723_v19  ;;  %v750_v24 = vadd.f32 %v717_v21, %v1908_v43 }
 0xc1a   :  { %v719_v20 = vpop.f32.mrf.mxu0 }
 0xc1b   :  { %1713 = vpow2.f32 %v1515_v22  ;;  %v1517_v23 = vmul.f32 -1.442695, %v750_v24 }
 0xc1c   :  { %v720_v27 = vpop.f32.mrf.mxu0 }
 0xc1d   :  { %1715 = vpow2.f32 %v1517_v23 }
 0xc28   :  { %v1714_v29 = vpop.eup %1713 }
 0xc29   :  { %v727_v34 = vadd.f32 1.0, %v1714_v29 }
 0xc2a   :  { %v1716_v36 = vpop.eup %1715 }
 0xc2b   :  { %1717 = vrcp.f32 %v727_v34  ;;  %v754_v25 = vadd.f32 1.0, %v1716_v36 }
 0xc2d   :  { %1719 = vrcp.f32 %v754_v25 }
 0xc38   :  { %v1718_v33 = vpop.eup %1717 }
 0xc39   :  { %v730_v37 = vmul.f32 2.0, %v1718_v33  ;;  %v732_v47 = vmul.f32 %v1718_v33, %v629_v63 }
 0xc3a   :  { %v1720_v39 = vpop.eup %1719 }
 0xc3b   :  { %v1516_v40 = vadd.f32 -1.0, %v730_v37  ;;  %v757_v46 = vmul.f32 2.0, %v1720_v39  ;;  %v759_v50 = vmul.f32 %v1720_v39, %v656_v53 }
 0xc3d   :  { %734 = vrot.lane.b32.xlu0 %v1516_v40, %s1762_s0  ;;  %v1518_v41 = vadd.f32 -1.0, %v757_v46 }
 0xc3f   :  { %761 = vrot.lane.b32.xlu1 %v1518_v41, %s1762_s0 }
 0xcaf   :  { %v735_v43 = vpop.permute.xlu0 %734 }
 0xcb0   :  { %v737_v42 = vmul.f32 %v1718_v33, %v735_v43 }
 0xcb1   :  { %v762_v44 = vpop.permute.xlu1 %761 }
 0xcb2   :  { %v764_v45 = vmul.f32 %v1720_v39, %v762_v44  ;;  %739 = vrot.lane.b32.xlu0 %v737_v42, %s1763_s3 }
 0xcb4   :  { %766 = vrot.lane.b32.xlu1 %v764_v45, %s1763_s3 }
 0xd24   :  { %v740_v48 = vpop.permute.xlu0 %739 }
 0xd25   :  { %v742_v3 = vadd.f32 %v740_v48, %v732_v47 }
 0xd26   :  { %v767_v52 = vpop.permute.xlu1 %766 }
 0xd27   :  { %1721 = vtanh.f32 %v742_v3  ;;  %v769_v38 = vadd.f32 %v767_v52, %v759_v50 }
 0xd29   :  { %1723 = vtanh.f32 %v769_v38 }
 0xd34   :  { %v1722_v54 = vpop.eup %1721 }
 0xd35   :  { %745 = vrot.lane.b32.xlu0 %v1722_v54, %s1762_s0 }
 0xd36   :  { %v1724_v49 = vpop.eup %1723 }
 0xd37   :  { %772 = vrot.lane.b32.xlu1 %v1724_v49, %s1762_s0 }
 0xda7   :  { %v746_v56 = vpop.permute.xlu0 %745 }
 0xda8   :  { %v748_v58 = vmul.f32 %v1718_v33, %v746_v56 }
 0xda9   :  { %v773_v60 = vpop.permute.xlu1 %772 }
 0xdaa   :  { %v2029_v61 = vmul.f32 %v1720_v39, %v773_v60  ;;  %777 = vrot.lane.b32.xlu0 %v748_v58, %s1763_s3 }
 0xdac   :  { %781 = vrot.lane.b32.xlu1 %v2029_v61, %s1762_s0 }
 0xe1c   :  { %v778_v62 = vpop.permute.xlu0 %777 }
 0xe1d   :  { %785 = vst.msk [vmem:[#allocation2 + $0x10] sm:$0xff] %vm334_vm3, %v778_v62 }
 0xe1e   :  { %v782_v63 = vpop.permute.xlu1 %781 }
 0xe1f   :  { %v784_v32 = vsel %vm334_vm3, %v778_v62, %v782_v63 }
 0xe20   :  { %v787_v0 = vpack.c.bf16 %v784_v32, %v784_v32 }
 0xe22   :  { %1519 = vmatmul.mubr.msk.bf16.vlgmr.msra.gmra.mxu1 %vm227_vm4, %v787_v0 }
 0xe23   :  { %1023 = vmatpush1.bf16.msra.mxu1 %v1813_v5  ;;  %1046 = vmatprep.mubr.bf16.mxu1 %v1761_v1 }
 0xe24   :  { %1024 = vmatprep.subr.bf16.mxu1 %v1822_v8 }
 0xe27   :  { %1025 = vmatpush1.bf16.msra.mxu1 %v1828_v9 }
 0xe28   :  { %1026 = vmatprep.subr.bf16.mxu1 %v1834_v10 }
 0xe2b   :  { %1027 = vmatpush1.bf16.msra.mxu1 %v1842_v11 }
 0xe2c   :  { %1028 = vmatprep.subr.bf16.mxu1 %v1849_v12 }
 0xe2f   :  { %1029 = vmatpush1.bf16.msra.mxu1 %v1860_v14 }
 0xee2   :  { %v825_v53 = vpop.f32.mrf.mxu1 }
 0xee3   :  { %v833_v2 = vadd.f32 %v825_v53, %v1914_v51 }
 0xee4   :  { %v827_v4 = vpop.f32.mrf.mxu1 }
 0xee5   :  { %v1520_v6 = vmul.f32 -1.442695, %v833_v2  ;;  %v860_v5 = vadd.f32 %v827_v4, %v1904_v35 }
 0xee6   :  { %v829_v1 = vpop.f32.mrf.mxu1 }
 0xee7   :  { %1725 = vpow2.f32 %v1520_v6  ;;  %v1522_v8 = vmul.f32 -1.442695, %v860_v5 }
 0xee8   :  { %v830_v28 = vpop.f32.mrf.mxu1 }
 0xee9   :  { %1727 = vpow2.f32 %v1522_v8 }
 0xef4   :  { %v1726_v9 = vpop.eup %1725 }
 0xef5   :  { %v837_v10 = vadd.f32 1.0, %v1726_v9 }
 0xef6   :  { %v1728_v57 = vpop.eup %1727 }
 0xef7   :  { %1729 = vrcp.f32 %v837_v10  ;;  %v864_v11 = vadd.f32 1.0, %v1728_v57 }
 0xef9   :  { %1731 = vrcp.f32 %v864_v11 }
 0xf04   :  { %v1730_v12 = vpop.eup %1729 }
 0xf05   :  { %v840_v14 = vmul.f32 2.0, %v1730_v12  ;;  %v842_v21 = vmul.f32 %v1730_v12, %v742_v3 }
 0xf06   :  { %v1732_v13 = vpop.eup %1731 }
 0xf07   :  { %v1521_v15 = vadd.f32 -1.0, %v840_v14  ;;  %v867_v51 = vmul.f32 2.0, %v1732_v13  ;;  %v869_v20 = vmul.f32 %v1732_v13, %v769_v38 }
 0xf09   :  { %844 = vrot.lane.b32.xlu0 %v1521_v15, %s1762_s0  ;;  %v1523_v16 = vadd.f32 -1.0, %v867_v51 }
 0xf0b   :  { %871 = vrot.lane.b32.xlu1 %v1523_v16, %s1762_s0 }
 0xf7b   :  { %v845_v35 = vpop.permute.xlu0 %844 }
 0xf7c   :  { %v847_v17 = vmul.f32 %v1730_v12, %v845_v35 }
 0xf7d   :  { %v872_v18 = vpop.permute.xlu1 %871 }
 0xf7e   :  { %v874_v19 = vmul.f32 %v1732_v13, %v872_v18  ;;  %849 = vrot.lane.b32.xlu0 %v847_v17, %s1763_s3 }
 0xf80   :  { %876 = vrot.lane.b32.xlu1 %v874_v19, %s1763_s3 }
 0xff0   :  { %v850_v22 = vpop.permute.xlu0 %849 }
 0xff1   :  { %v852_v24 = vadd.f32 %v850_v22, %v842_v21 }
 0xff2   :  { %v877_v23 = vpop.permute.xlu1 %876 }
 0xff3   :  { %1733 = vtanh.f32 %v852_v24  ;;  %v879_v27 = vadd.f32 %v877_v23, %v869_v20 }
 0xff5   :  { %1735 = vtanh.f32 %v879_v27 }
0x1000   :  { %v1734_v29 = vpop.eup %1733 }
0x1001   :  { %855 = vrot.lane.b32.xlu0 %v1734_v29, %s1762_s0 }
0x1002   :  { %v1736_v34 = vpop.eup %1735 }
0x1003   :  { %882 = vrot.lane.b32.xlu1 %v1736_v34, %s1762_s0 }
0x1073   :  { %v856_v36 = vpop.permute.xlu0 %855 }
0x1074   :  { %v2053_v25 = vmul.f32 %v1730_v12, %v856_v36 }
0x1075   :  { %v883_v33 = vpop.permute.xlu1 %882 }
0x1076   :  { %v885_v37 = vmul.f32 %v1732_v13, %v883_v33  ;;  %887 = vrot.lane.b32.xlu0 %v2053_v25, %s1763_s3 }
0x1078   :  { %891 = vrot.lane.b32.xlu1 %v885_v37, %s1762_s0 }
0x10e8   :  { %v888_v39 = vpop.permute.xlu0 %887 }
0x10ea   :  { %v2058_v40 = vpop.permute.xlu1 %891 }
0x10eb   :  { %v894_v46 = vsel %vm334_vm3, %v888_v39, %v2058_v40 }
0x10ec   :  { %v900_v41 = vpack.c.bf16 %v894_v46, %v894_v46 }
0x10ee   :  { %1524 = vmatmul.mubr.msk.bf16.vlgmr.msra.gmra.mxu0 %vm227_vm4, %v900_v41 }
0x11ae   :  { %v938_v43 = vpop.f32.mrf.mxu0 }
0x11af   :  { %v946_v42 = vadd.f32 %v938_v43, %v1918_v55 }
0x11b0   :  { %v940_v44 = vpop.f32.mrf.mxu0 }
0x11b1   :  { %v1525_v45 = vmul.f32 -1.442695, %v946_v42  ;;  %v973_v47 = vadd.f32 %v940_v44, %v1900_v30 }
0x11b2   :  { %v942_v48 = vpop.f32.mrf.mxu0 }
0x11b3   :  { %1737 = vpow2.f32 %v1525_v45  ;;  %v1527_v3 = vmul.f32 -1.442695, %v973_v47 }
0x11b4   :  { %v943_v50 = vpop.f32.mrf.mxu0 }
0x11b5   :  { %1739 = vpow2.f32 %v1527_v3 }
0x11c0   :  { %v1738_v52 = vpop.eup %1737 }
0x11c1   :  { %v950_v38 = vadd.f32 1.0, %v1738_v52 }
0x11c2   :  { %v1740_v54 = vpop.eup %1739 }
0x11c3   :  { %1741 = vrcp.f32 %v950_v38  ;;  %v977_v49 = vadd.f32 1.0, %v1740_v54  ;;  %v1633_v38 = vld [vmem:[%s2224_s4 + $0x78] sm:$0xff]  }
0x11c4   :  { %v1634_v54 = vld [vmem:[%s2224_s4 + $0x38] sm:$0xff]   ;;  %1567 = vmatprep.subr.bf16.mxu0 %v1633_v38 }
0x11c5   :  { %1743 = vrcp.f32 %v977_v49  ;;  %v1635_v49 = vld [vmem:[%s2224_s4 + $0x70] sm:$0xff]   ;;  %1568 = vmatpush3.bf16.msra.mxu0 %v1634_v54 }
0x11c6   :  { %1569 = vmatprep.subr.bf16.mxu0 %v1635_v49 }
0x11d0   :  { %v1742_v56 = vpop.eup %1741 }
0x11d1   :  { %v953_v58 = vmul.f32 2.0, %v1742_v56  ;;  %v955_v2 = vmul.f32 %v1742_v56, %v852_v24 }
0x11d2   :  { %v1744_v60 = vpop.eup %1743 }
0x11d3   :  { %v1526_v62 = vadd.f32 -1.0, %v953_v58  ;;  %v980_v55 = vmul.f32 2.0, %v1744_v60  ;;  %v982_v5 = vmul.f32 %v1744_v60, %v879_v27  ;;  %v1639_v58 = vld [vmem:[%s2224_s4 + $0x68] sm:$0xff]  }
0x11d5   :  { %957 = vrot.lane.b32.xlu0 %v1526_v62, %s1762_s0  ;;  %v1528_v63 = vadd.f32 -1.0, %v980_v55  ;;  %v1641_v62 = vld [vmem:[%s2224_s4 + $0x28] sm:$0xff]   ;;  %v1642_v55 = vld [vmem:[%s2224_s4 + $0xb0] sm:$0xff]  }
0x11d7   :  { %984 = vrot.lane.b32.xlu1 %v1528_v63, %s1762_s0  ;;  %v1643_v63 = vld [vmem:[%s2224_s4 + $0x60] sm:$0xff]  }
0x1247   :  { %v958_v30 = vpop.permute.xlu0 %957 }
0x1248   :  { %v960_v32 = vmul.f32 %v1742_v56, %v958_v30  ;;  %v1644_v30 = vld [vmem:[%s2224_s4 + $0xe8] sm:$0xff]  }
0x1249   :  { %v985_v0 = vpop.permute.xlu1 %984 }
0x124a   :  { %v987_v53 = vmul.f32 %v1744_v60, %v985_v0  ;;  %962 = vrot.lane.b32.xlu0 %v960_v32, %s1763_s3  ;;  %v1645_v32 = vld [vmem:[%s2224_s4 + $0x20] sm:$0xff]   ;;  %v1646_v0 = vld [vmem:[%s2224_s4 + $0xa8] sm:$0xff]  }
0x124c   :  { %989 = vrot.lane.b32.xlu1 %v987_v53, %s1763_s3  ;;  %v1647_v53 = vld [vmem:[%s2224_s4 + $0x58] sm:$0xff]  }
0x12bc   :  { %v963_v4 = vpop.permute.xlu0 %962 }
0x12bd   :  { %v965_v6 = vadd.f32 %v963_v4, %v955_v2  ;;  %v1648_v2 = vld [vmem:[%s2224_s4 + $0xe0] sm:$0xff]   ;;  %v1649_v4 = vld [vmem:[%s2224_s4 + $0x18] sm:$0xff]  }
0x12be   :  { %v990_v1 = vpop.permute.xlu1 %989 }
0x12bf   :  { %1745 = vtanh.f32 %v965_v6  ;;  %v992_v8 = vadd.f32 %v990_v1, %v982_v5  ;;  %v1651_v5 = vld [vmem:[%s2224_s4 + $0x50] sm:$0xff]   ;;  %v1652_v1 = vld [vmem:[%s2224_s4 + $0xd8] sm:$0xff]  }
0x12c1   :  { %1747 = vtanh.f32 %v992_v8 }
0x12cc   :  { %v1746_v28 = vpop.eup %1745 }
0x12cd   :  { %968 = vrot.lane.b32.xlu0 %v1746_v28, %s1762_s0  ;;  %v1654_v28 = vld [vmem:[%s2224_s4 + $0x98] sm:$0xff]  }
0x12ce   :  { %v1748_v9 = vpop.eup %1747 }
0x12cf   :  { %995 = vrot.lane.b32.xlu1 %v1748_v9, %s1762_s0  ;;  %v1655_v9 = vld [vmem:[%s2224_s4 + $0x48] sm:$0xff]  }
0x133f   :  { %v969_v10 = vpop.permute.xlu0 %968 }
0x1340   :  { %v971_v57 = vmul.f32 %v1742_v56, %v969_v10  ;;  %v1638_v56 = vld [vmem:[%s2224_s4 + $0xb8] sm:$0xff]   ;;  %v1656_v10 = vld [vmem:[%s2224_s4 + $0xd0] sm:$0xff]  }
0x1341   :  { %v996_v11 = vpop.permute.xlu1 %995 }
0x1342   :  { %v2071_v12 = vmul.f32 %v1744_v60, %v996_v11  ;;  %1000 = vrot.lane.b32.xlu0 %v971_v57, %s1763_s3  ;;  %v1640_v60 = vld [vmem:[%s2224_s4 + $0xf0] sm:$0xff]   ;;  %v1657_v57 = vld [vmem:[%s2224_s4 + $0x8] sm:$0xff]  }
0x1343   :  { %v1658_v11 = vld [vmem:[%s2224_s4 + $0x90] sm:$0xff]  }
0x1344   :  { %1004 = vrot.lane.b32.xlu1 %v2071_v12, %s1762_s0 }
0x13b4   :  { %v1001_v14 = vpop.permute.xlu0 %1000 }
0x13b5   :  { %1008 = vst.msk [vmem:[#allocation2 + $0x18] sm:$0xff] %vm334_vm3, %v1001_v14 }
0x13b6   :  { %v1005_v13 = vpop.permute.xlu1 %1004 }
0x13b7   :  { %v1007_v15 = vsel %vm334_vm3, %v1001_v14, %v1005_v13  ;;  %v1659_v14 = vld [vmem:[%s2224_s4 + $0x40] sm:$0xff]   ;;  %v1660_v13 = vld [vmem:[%s2224_s4 + $0xc8] sm:$0xff]  }
0x13b8   :  { %v1010_v51 = vpack.c.bf16 %v1007_v15, %v1007_v15  ;;  %v1661_v15 = vld [vmem:[%s2224_s4] sm:$0xff]  }
0x13ba   :  { %1529 = vmatmul.mubr.msk.bf16.vlgmr.msra.gmra.mxu1 %vm227_vm4, %v1010_v51  ;;  %v1662_v51 = vld [vmem:[%s2224_s4 + $0x88] sm:$0xff]  }
0x147a   :  { %v1048_v16 = vpop.f32.mrf.mxu1 }
0x147b   :  { %v1056_v35 = vadd.f32 %v1048_v16, %v1922_v59 }
0x147c   :  { %v1050_v17 = vpop.f32.mrf.mxu1 }
0x147d   :  { %v1530_v18 = vmul.f32 -1.442695, %v1056_v35  ;;  %v1083_v19 = vadd.f32 %v1050_v17, %v1896_v26  ;;  %v1663_v17 = vld [vmem:[%s2224_s4 + $0xc0] sm:$0xff]  }
0x147e   :  { %v1052_v21 = vpop.f32.mrf.mxu1 }
0x147f   :  { %1749 = vpow2.f32 %v1530_v18  ;;  %v1532_v22 = vmul.f32 -1.442695, %v1083_v19  ;;  %v1664_v19 = vld [vmem:[%s2224_s4 + $0x80] sm:$0xff]  }
0x1480   :  { %v1053_v24 = vpop.f32.mrf.mxu1 }
0x1481   :  { %1751 = vpow2.f32 %v1532_v22 }
0x148c   :  { %v1750_v20 = vpop.eup %1749 }
0x148d   :  { %v1060_v23 = vadd.f32 1.0, %v1750_v20 }
0x148e   :  { %v1752_v27 = vpop.eup %1751 }
0x148f   :  { %1753 = vrcp.f32 %v1060_v23  ;;  %v1087_v29 = vadd.f32 1.0, %v1752_v27 }
0x1491   :  { %1755 = vrcp.f32 %v1087_v29 }
0x149c   :  { %v2081_v34 = vpop.eup %1753 }
0x149d   :  { %v1063_v36 = vmul.f32 2.0, %v2081_v34  ;;  %v1065_v42 = vmul.f32 %v2081_v34, %v965_v6  ;;  %v1650_v6 = vld [vmem:[%s2224_s4 + $0xa0] sm:$0xff]  }
0x149e   :  { %v2084_v59 = vpop.eup %1755 }
0x149f   :  { %v1531_v33 = vadd.f32 -1.0, %v1063_v36  ;;  %v1090_v26 = vmul.f32 2.0, %v2084_v59  ;;  %v1092_v47 = vmul.f32 %v2084_v59, %v992_v8  ;;  %v1653_v8 = vld [vmem:[%s2224_s4 + $0x10] sm:$0xff]  }
0x14a1   :  { %1067 = vrot.lane.b32.xlu1 %v1531_v33, %s1762_s0  ;;  %v1533_v37 = vadd.f32 -1.0, %v1090_v26 }
0x14a3   :  { %1094 = vrot.lane.b32.xlu0 %v1533_v37, %s1762_s0 }
0x1513   :  { %v1068_v39 = vpop.permute.xlu1 %1067 }
0x1514   :  { %v1070_v46 = vmul.f32 %v2081_v34, %v1068_v39  ;;  %v1534_v39 = vld [vmem:[%s2225_s5] ss:$0 sm:$0xff] }
0x1515   :  { %v1095_v41 = vpop.permute.xlu0 %1094 }
0x1516   :  { %v1097_v43 = vmul.f32 %v2084_v59, %v1095_v41  ;;  %1072 = vrot.lane.b32.xlu1 %v1070_v46, %s1763_s3 }
0x1518   :  { %1099 = vrot.lane.b32.xlu0 %v1097_v43, %s1763_s3 }
0x1588   :  { %v1073_v44 = vpop.permute.xlu1 %1072 }
0x1589   :  { %v1075_v45 = vadd.f32 %v1073_v44, %v1065_v42 }
0x158a   :  { %v1100_v48 = vpop.permute.xlu0 %1099 }
0x158b   :  { %1757 = vtanh.f32 %v1075_v45  ;;  %v1102_v3 = vadd.f32 %v1100_v48, %v1092_v47 }
0x158d   :  { %1759 = vtanh.f32 %v1102_v3 }
0x1598   :  { %v1758_v50 = vpop.eup %1757 }
0x1599   :  { %1078 = vrot.lane.b32.xlu1 %v1758_v50, %s1762_s0 }
0x159a   :  { %v1760_v52 = vpop.eup %1759 }
0x159b   :  { %1105 = vrot.lane.b32.xlu0 %v1760_v52, %s1762_s0 }
0x159d   :  { %447 = vrot.lane.b32.xlu1 %v1957_v31, %s1764_s23  ;;  %v1636_v31 = vld [vmem:[%s2224_s4 + $0xf8] sm:$0xff]  }
0x159e   :  { %1589 = vmatprep.subr.bf16.mxu1 %v1636_v31 }
0x159f   :  { %672 = vrot.lane.b32.xlu0 %v2005_v7, %s1764_s23  ;;  %v1637_v7 = vld [vmem:[%s2224_s4 + $0x30] sm:$0xff]   ;;  %1590 = vmatpush3.bf16.msra.mxu1 %v1638_v56 }
0x15a0   :  { %1570 = vmatpush3.bf16.msra.mxu0 %v1637_v7  ;;  %1591 = vmatprep.subr.bf16.mxu1 %v1640_v60 }
0x15a1   :  { %1571 = vmatprep.subr.bf16.mxu0 %v1639_v58 }
0x15a3   :  { %1592 = vmatpush3.bf16.msra.mxu1 %v1642_v55 }
0x15a4   :  { %1572 = vmatpush3.bf16.msra.mxu0 %v1641_v62  ;;  %1593 = vmatprep.subr.bf16.mxu1 %v1644_v30 }
0x15a5   :  { %1573 = vmatprep.subr.bf16.mxu0 %v1643_v63 }
0x15a7   :  { %1594 = vmatpush3.bf16.msra.mxu1 %v1646_v0 }
0x15a8   :  { %1574 = vmatpush3.bf16.msra.mxu0 %v1645_v32  ;;  %1595 = vmatprep.subr.bf16.mxu1 %v1648_v2 }
0x15a9   :  { %1575 = vmatprep.subr.bf16.mxu0 %v1647_v53 }
0x15ab   :  { %1596 = vmatpush3.bf16.msra.mxu1 %v1650_v6 }
0x15ac   :  { %1576 = vmatpush3.bf16.msra.mxu0 %v1649_v4  ;;  %1597 = vmatprep.subr.bf16.mxu1 %v1652_v1 }
0x15ad   :  { %1577 = vmatprep.subr.bf16.mxu0 %v1651_v5 }
0x15af   :  { %1598 = vmatpush3.bf16.msra.mxu1 %v1654_v28 }
0x15b0   :  { %1578 = vmatpush3.bf16.msra.mxu0 %v1653_v8  ;;  %1599 = vmatprep.subr.bf16.mxu1 %v1656_v10 }
0x15b1   :  { %1579 = vmatprep.subr.bf16.mxu0 %v1655_v9 }
0x15b3   :  { %1600 = vmatpush3.bf16.msra.mxu1 %v1658_v11 }
0x15b4   :  { %1580 = vmatpush3.bf16.msra.mxu0 %v1657_v57  ;;  %1601 = vmatprep.subr.bf16.mxu1 %v1660_v13 }
0x15b5   :  { %1581 = vmatprep.subr.bf16.mxu0 %v1659_v14 }
0x15b7   :  { %1602 = vmatpush3.bf16.msra.mxu1 %v1662_v51 }
0x15b8   :  { %1582 = vmatpush3.bf16.msra.mxu0 %v1661_v15  ;;  %1603 = vmatprep.subr.bf16.mxu1 %v1663_v17 }
0x15bb   :  { %1604 = vmatpush3.bf16.msra.mxu1 %v1664_v19 }
0x160b   :  { %v1079_v16 = vpop.permute.xlu1 %1078 }
0x160c   :  { %v1081_v35 = vmul.f32 %v2081_v34, %v1079_v16 }
0x160d   :  { %v1106_v18 = vpop.permute.xlu0 %1105 }
0x160e   :  { %v1108_v21 = vmul.f32 %v2084_v59, %v1106_v18  ;;  %1110 = vrot.lane.b32.xlu1 %v1081_v35, %s1764_s23 }
0x160f   :  { %v448_v22 = vpop.permute.xlu1 %447 }
0x1610   :  { %451 = vst.msk [vmem:[#allocation2] sm:$0xff] %vm450_vm6, %v448_v22  ;;  %1115 = vrot.lane.b32.xlu0 %v1108_v21, %s1762_s0 }
0x1611   :  { %1009 = vst.msk [vmem:[#allocation2] sm:$0xff] %vm337_vm2, %v2071_v12  ;;  %v673_v24 = vpop.permute.xlu0 %672 }
0x1612   :  { %675 = vst.msk [vmem:[#allocation2 + $0x8] sm:$0xff] %vm450_vm6, %v673_v24 }
0x1613   :  { %786 = vst.msk [vmem:[#allocation2 + $0x8] sm:$0xff] %vm337_vm2, %v2029_v61 }
0x1614   :  { %899 = vst.msk [vmem:[#allocation2 + $0x8] sm:$0xff] %vm452_vm5, %v2058_v40  ;;  %895 = vrot.lane.b32.xlu0 %v2053_v25, %s1764_s23 }
0x161b   :  { %v1120_v20 = vld [vmem:[#allocation2 + $0x8] sm:$0xff] }
0x161c   :  { %v1124_v23 = vpack.c.bf16 %v1120_v20, %v1120_v20 }
0x161e   :  { %1422 = vmatprep.mubr.bf16.mxu0 %v1124_v23 }
0x1680   :  { %v1111_v27 = vpop.permute.xlu1 %1110 }
0x1681   :  { %1113 = vst.msk [vmem:[#allocation2 + $0x18] sm:$0xff] %vm450_vm6, %v1111_v27 }
0x1682   :  { %v1116_v29 = vpop.permute.xlu0 %1115 }
0x1683   :  { %1118 = vst.msk [vmem:[#allocation2] sm:$0xff] %vm452_vm5, %v1116_v29 }
0x1686   :  { %v896_v12 = vpop.permute.xlu0 %895 }
0x1687   :  { %898 = vst.msk [vmem:[#allocation2 + $0x10] sm:$0xff] %vm450_vm6, %v896_v12 }
0x1688   :  { %v1122_v34 = vld [vmem:[#allocation2 + $0x18] sm:$0xff] }
0x1689   :  { %v1126_v61 = vpack.c.bf16 %v1122_v34, %v1122_v34 }
0x168a   :  { %v1119_v36 = vld [vmem:[#allocation2] sm:$0xff] }
0x168b   :  { %1462 = vmatprep.mubr.bf16.mxu1 %v1126_v61  ;;  %v1123_v40 = vpack.c.bf16 %v1119_v36, %v1119_v36 }
0x168d   :  { %1423 = vmatmul.mubr.bf16.vlgmr.msra.gmra.mxu0 %v1123_v40 }
0x168e   :  { %v1121_v59 = vld [vmem:[#allocation2 + $0x10] sm:$0xff] }
0x168f   :  { %v1125_v25 = vpack.c.bf16 %v1121_v59, %v1121_v59 }
0x1691   :  { %1463 = vmatmul.mubr.bf16.vlgmr.msra.gmra.mxu1 %v1125_v25 }
0x174d   :  { %v1583_v33 = vpop.f32.mrf.mxu0 }
0x174f   :  { %v1584_v26 = vpop.f32.mrf.mxu0 }
0x1750   :  { %v1585_v37 = vadd.f32 %v1584_v26, %v1583_v33 }
0x1751   :  { %v1586_v46 = vpop.f32.mrf.mxu0  ;;  %v1605_v41 = vpop.f32.mrf.mxu1 }
0x1752   :  { %v1425_v44 = vadd.f32 %v1585_v37, %v1534_v39 }
0x1753   :  { %v1587_v43 = vpop.f32.mrf.mxu0  ;;  %v1606_v42 = vpop.f32.mrf.mxu1 }
0x1754   :  { %v1607_v45 = vadd.f32 %v1606_v42, %v1605_v41 }
0x1755   :  { %v1608_v47 = vpop.f32.mrf.mxu1 }
0x1756   :  { %v1465_v48 = vadd.f32 %v1607_v45, %v1425_v44 }
0x1757   :  { %v1609_v3 = vpop.f32.mrf.mxu1 }
0x1758   :  { %1471 = vst.msk [vmem:[%s2226_s6] sm:$0xff] %vm1470_vm7, %v1465_v48 }

</bundles_post_ra>
